<compile_context>
chip_gen: v7x
topology: tpu7x:2x2x1
jax: 0.10.0
libtpu: 0.0.40
codegen_flags: <defaults>
</compile_context>

<pallas_src>
import functools
import numpy as np
import jax
import jax.numpy as jnp
from jax.experimental import pallas as pl
from jax.experimental.pallas import tpu as pltpu


# ---------------------------------------------------------------------------
# PyTorch-compatible bicubic + antialias resize weights (host-side setup)
# ---------------------------------------------------------------------------
def _cubic_aa(x, a=-0.5):
    # Matches PyTorch's HelperInterpCubic::aa_filter (a = -0.5, as in PIL).
    x = abs(x)
    if x < 1.0:
        return ((a + 2.0) * x - (a + 3.0)) * x * x + 1.0
    if x < 2.0:
        return (((x - 5.0) * x + 8.0) * x - 4.0) * a
    return 0.0


def _resize_matrix(in_size, out_size):
    """Dense (out_size, in_size) 1-D operator equal to
    F.interpolate(..., mode='bicubic', antialias=True, align_corners=False)."""
    scale = in_size / out_size
    support = 2.0 * scale if scale >= 1.0 else 2.0
    invscale = 1.0 / scale if scale >= 1.0 else 1.0
    m = np.zeros((out_size, in_size), dtype=np.float64)
    for i in range(out_size):
        center = scale * (i + 0.5)
        xmin = max(int(center - support + 0.5), 0)
        xmax = min(int(center + support + 0.5), in_size)
        ws = np.array(
            [_cubic_aa((j + xmin - center + 0.5) * invscale) for j in range(xmax - xmin)],
            dtype=np.float64,
        )
        total = ws.sum()
        if total != 0.0:
            ws = ws / total
        m[i, xmin:xmax] = ws
    return m


# ---------------------------------------------------------------------------
# Pallas kernels
# ---------------------------------------------------------------------------
def _conv_stats_kernel(cols_ref, w_ref, conv_ref, stats_ref):
    """3x3 conv as an MXU matmul tile + per-channel BN partial sums.

    cols_ref : (1, 9*Cin, HWt)   im2col tile of one image
    w_ref    : (Cout, 9*Cin)
    conv_ref : (1, Cout, HWt)
    stats_ref: (1, Cout, 2)      [..., 0] = sum, [..., 1] = sum of squares,
                                 accumulated across the HW-tile grid axis.
    """
    y = jnp.dot(w_ref[...], cols_ref[0], preferred_element_type=jnp.float32)  # (Cout, HWt)
    conv_ref[...] = y[None, :, :]

    @pl.when(pl.program_id(1) == 0)
    def _init():
        stats_ref[...] = jnp.zeros_like(stats_ref)

    s1 = jnp.sum(y, axis=1, keepdims=True)        # (Cout, 1)
    s2 = jnp.sum(y * y, axis=1, keepdims=True)    # (Cout, 1)
    stats_ref[...] += jnp.concatenate([s1, s2], axis=1)[None, :, :]


def _bn_act_kernel(z_ref, sc_ref, sh_ref, ut_ref, u_ref, dt_ref, d_ref, o_ref):
    """Fused BN1 affine + CNO_LReLu (separable AA-bicubic up x2, LeakyReLU, down).

    z_ref           : (Bt, S, S)   conv1 outputs, one (n, c) image per row
    sc_ref / sh_ref : (Bt, 1, 1)   per-image BN scale / shift
    ut_ref : (S, 2S) = U^T    u_ref : (2S, S) = U
    dt_ref : (2S, S) = D^T    d_ref : (S, 2S) = D
    o_ref           : (Bt, S, S)
    """
    bt, s, _ = z_ref.shape
    s2 = 2 * s
    z = z_ref[...] * sc_ref[...] + sh_ref[...]

    # Upsample width then height:  up = U @ z @ U^T   (batched MXU matmuls).
    ut_b = jnp.broadcast_to(ut_ref[...], (bt, s, s2))
    t1 = jnp.einsum('bHW,bWw->bHw', z, ut_b, preferred_element_type=jnp.float32)
    u_b = jnp.broadcast_to(u_ref[...], (bt, s2, s))
    up = jnp.einsum('bhH,bHw->bhw', u_b, t1, preferred_element_type=jnp.float32)

    act = jnp.where(up >= 0.0, up, 0.01 * up)     # LeakyReLU(negative_slope=0.01)

    # Downsample width then height: out = D @ act @ D^T.
    dt_b = jnp.broadcast_to(dt_ref[...], (bt, s2, s))
    d1 = jnp.einsum('bhw,bwj->bhj', act, dt_b, preferred_element_type=jnp.float32)
    d_b = jnp.broadcast_to(d_ref[...], (bt, s, s2))
    o_ref[...] = jnp.einsum('bih,bhj->bij', d_b, d1, preferred_element_type=jnp.float32)


def _bn_res_kernel(y_ref, sc_ref, sh_ref, x_ref, o_ref):
    """out = x + BN2(conv2), with precomputed per-channel scale / shift."""
    o_ref[...] = x_ref[...] + y_ref[...] * sc_ref[...] + sh_ref[...]


# ---------------------------------------------------------------------------
# pallas_call wrappers
# ---------------------------------------------------------------------------
def _pick_divisor(n, cap):
    for d in range(min(n, cap), 0, -1):
        if n % d == 0:
            return d
    return 1


def _pick_hw_tile(hw, cap=2048):
    # Largest lane-aligned tile (<= cap) that divides H*W; whole extent if small.
    if hw <= cap:
        return hw
    for t in range(cap - cap % 128, 127, -128):
        if hw % t == 0:
            return t
    return hw


def _conv_bn_stats(cols, wmat):
    n, kc, hw = cols.shape
    cout = wmat.shape[0]
    hwt = _pick_hw_tile(hw)
    grid = (n, hw // hwt)
    conv, stats = pl.pallas_call(
        _conv_stats_kernel,
        out_shape=(jax.ShapeDtypeStruct((n, cout, hw), jnp.float32),
                   jax.ShapeDtypeStruct((n, cout, 2), jnp.float32)),
        grid=grid,
        in_specs=[pl.BlockSpec((1, kc, hwt), lambda i, j: (i, 0, j)),
                  pl.BlockSpec((cout, kc), lambda i, j: (0, 0))],
        out_specs=(pl.BlockSpec((1, cout, hwt), lambda i, j: (i, 0, j)),
                   pl.BlockSpec((1, cout, 2), lambda i, j: (i, 0, 0))),
        compiler_params=pltpu.CompilerParams(
            dimension_semantics=("parallel", "arbitrary")),
    )(cols, wmat)
    return conv, stats


def _bn_act(z, scale_rows, shift_rows, up_t, up, dn_t, dn):
    b, s, _ = z.shape
    s2 = 2 * s
    bt = _pick_divisor(b, 16)
    return pl.pallas_call(
        _bn_act_kernel,
        out_shape=jax.ShapeDtypeStruct((b, s, s), jnp.float32),
        grid=(b // bt,),
        in_specs=[pl.BlockSpec((bt, s, s), lambda i: (i, 0, 0)),
                  pl.BlockSpec((bt, 1, 1), lambda i: (i, 0, 0)),
                  pl.BlockSpec((bt, 1, 1), lambda i: (i, 0, 0)),
                  pl.BlockSpec((s, s2), lambda i: (0, 0)),
                  pl.BlockSpec((s2, s), lambda i: (0, 0)),
                  pl.BlockSpec((s2, s), lambda i: (0, 0)),
                  pl.BlockSpec((s, s2), lambda i: (0, 0))],
        out_specs=pl.BlockSpec((bt, s, s), lambda i: (i, 0, 0)),
        compiler_params=pltpu.CompilerParams(dimension_semantics=("parallel",)),
    )(z, scale_rows, shift_rows, up_t, up, dn_t, dn)


def _bn_residual(conv, scale, shift, x_flat):
    n, c, hw = conv.shape
    return pl.pallas_call(
        _bn_res_kernel,
        out_shape=jax.ShapeDtypeStruct((n, c, hw), jnp.float32),
        grid=(n,),
        in_specs=[pl.BlockSpec((1, c, hw), lambda i: (i, 0, 0)),
                  pl.BlockSpec((1, c, 1), lambda i: (0, 0, 0)),
                  pl.BlockSpec((1, c, 1), lambda i: (0, 0, 0)),
                  pl.BlockSpec((1, c, hw), lambda i: (i, 0, 0))],
        out_specs=pl.BlockSpec((1, c, hw), lambda i: (i, 0, 0)),
        compiler_params=pltpu.CompilerParams(dimension_semantics=("parallel",)),
    )(conv, scale, shift, x_flat)


# ---------------------------------------------------------------------------
# Glue: im2col, weight packing, BN finalize
# ---------------------------------------------------------------------------
def _im2col3x3(x):
    """(N, C, H, W) -> (N, 9*C, H*W) for a 3x3 same-padded conv (tap-major, channel-minor)."""
    n, c, h, w = x.shape
    xp = jnp.pad(x, ((0, 0), (0, 0), (1, 1), (1, 1)))
    taps = [xp[:, :, dy:dy + h, dx:dx + w] for dy in range(3) for dx in range(3)]
    cols = jnp.stack(taps, axis=1)            # (N, 9, C, H, W)
    return cols.reshape(n, 9 * c, h * w)


def _torch_conv_w_to_mat(w):
    """(Cout, Cin, 3, 3) -> (Cout, 9*Cin), matching the im2col tap/channel order."""
    cout, cin = w.shape[0], w.shape[1]
    return jnp.transpose(w, (0, 2, 3, 1)).reshape(cout, 9 * cin)


def _bn_scale_shift(stats, gamma, beta, count, eps=1e-5):
    tot = jnp.sum(stats, axis=0)                              # (C, 2)
    mean = tot[:, 0] / count
    var = jnp.maximum(tot[:, 1] / count - mean * mean, 0.0)   # biased batch variance
    inv = jax.lax.rsqrt(var + eps)
    scale = gamma * inv
    shift = beta - mean * scale
    return scale, shift


# ---------------------------------------------------------------------------
# Parameter init + forward
# ---------------------------------------------------------------------------
def init_residual_block_params(key, channels, size):
    k1, k2, k3, k4 = jax.random.split(key, 4)
    fan_in = channels * 9
    bound = 1.0 / np.sqrt(fan_in)
    params = {
        # PyTorch Conv2d layout: (Cout, Cin, kh, kw)
        "w1": jax.random.uniform(k1, (channels, channels, 3, 3), jnp.float32, -bound, bound),
        "w2": jax.random.uniform(k2, (channels, channels, 3, 3), jnp.float32, -bound, bound),
        # Kept for parity with the PyTorch module but unused in compute: with
        # training-mode BatchNorm the conv bias is exactly canceled by the
        # batch-mean subtraction.
        "b1": jax.random.uniform(k3, (channels,), jnp.float32, -bound, bound),
        "b2": jax.random.uniform(k4, (channels,), jnp.float32, -bound, bound),
        "gamma1": jnp.ones((channels,), jnp.float32),
        "beta1": jnp.zeros((channels,), jnp.float32),
        "gamma2": jnp.ones((channels,), jnp.float32),
        "beta2": jnp.zeros((channels,), jnp.float32),
    }
    up = _resize_matrix(size, 2 * size)        # (2S, S)  AA-bicubic upsample
    dn = _resize_matrix(2 * size, size)        # (S, 2S)  AA-bicubic downsample
    params["up"] = jnp.asarray(up, jnp.float32)
    params["up_t"] = jnp.asarray(up.T, jnp.float32)
    params["dn"] = jnp.asarray(dn, jnp.float32)
    params["dn_t"] = jnp.asarray(dn.T, jnp.float32)
    return params


def residual_block_forward(params, x):
    """x: (N, C, H, W) float32 NCHW (same as PyTorch); returns NCHW."""
    n, c, h, w = x.shape
    hw = h * w
    count = float(n * hw)

    w1 = _torch_conv_w_to_mat(params["w1"])
    w2 = _torch_conv_w_to_mat(params["w2"])

    # conv1 (MXU matmul) + BN1 partial statistics
    conv1, stats1 = _conv_bn_stats(_im2col3x3(x), w1)          # (N,C,HW), (N,C,2)
    scale1, shift1 = _bn_scale_shift(stats1, params["gamma1"], params["beta1"], count)

    # BN1 affine + CNO_LReLu (separable AA-bicubic up x2, LeakyReLU, down)
    z = conv1.reshape(n * c, h, w)
    sc_rows = jnp.tile(scale1, n).reshape(n * c, 1, 1)
    sh_rows = jnp.tile(shift1, n).reshape(n * c, 1, 1)
    act = _bn_act(z, sc_rows, sh_rows,
                  params["up_t"], params["up"], params["dn_t"], params["dn"])
    act = act.reshape(n, c, h, w)

    # conv2 + BN2 partial statistics
    conv2, stats2 = _conv_bn_stats(_im2col3x3(act), w2)
    scale2, shift2 = _bn_scale_shift(stats2, params["gamma2"], params["beta2"], count)

    # BN2 affine + residual add
    out = _bn_residual(conv2, scale2.reshape(1, c, 1), shift2.reshape(1, c, 1),
                       x.reshape(n, c, hw))
    return out.reshape(n, c, h, w)


if __name__ == "__main__":
    key = jax.random.PRNGKey(0)
    k_x, k_p = jax.random.split(key)

    N, C, SIZE = 2, 4, 16
    x = jax.random.normal(k_x, (N, C, SIZE, SIZE), jnp.float32)
    params = init_residual_block_params(k_p, C, SIZE)

    fwd = jax.jit(functools.partial(residual_block_forward, params))
    out = jax.block_until_ready(fwd(x))

    assert out.shape == (N, C, SIZE, SIZE)
    assert bool(jnp.all(jnp.isfinite(out)))
    print("KERNEL_OK")
</pallas_src>

<mosaic_0001>
module attributes {stable_mosaic.version = 11 : i64} {
  func.func @_conv_stats_kernel(%arg0: i32, %arg1: i32, %arg2: memref<1x36x256xf32, #tpu.memory_space<vmem>>, %arg3: memref<4x36xf32, #tpu.memory_space<vmem>>, %arg4: memref<1x4x256xf32, #tpu.memory_space<vmem>>, %arg5: memref<1x4x2xf32, #tpu.memory_space<vmem>>) attributes {dimension_semantics = [#tpu.dimension_semantics<parallel>, #tpu.dimension_semantics<arbitrary>], iteration_bounds = array<i64: 2, 1>, scalar_prefetch = 0 : i64, scratch_operands = 0 : i64, tpu.core_type = #tpu.core_type<tc>, window_params = [{transform_indices = @transform_0, window_bounds = array<i64: 1, 36, 256>}, {pipeline_mode = #tpu.pipeline_mode<synchronous>, transform_indices = @transform_1, window_bounds = array<i64: 4, 36>}, {transform_indices = @transform_2, window_bounds = array<i64: 1, 4, 256>}, {transform_indices = @transform_3, window_bounds = array<i64: 1, 4, 2>}]} {
    %c0 = arith.constant 0 : index
    %c0_0 = arith.constant 0 : index
    %0 = vector.load %arg3[%c0, %c0_0] : memref<4x36xf32, #tpu.memory_space<vmem>>, vector<4x36xf32>
    %c0_1 = arith.constant 0 : index
    %c0_2 = arith.constant 0 : index
    %c0_3 = arith.constant 0 : index
    %1 = vector.load %arg2[%c0_1, %c0_2, %c0_3] : memref<1x36x256xf32, #tpu.memory_space<vmem>>, vector<1x36x256xf32>
    %2 = vector.shape_cast %1 : vector<1x36x256xf32> to vector<36x256xf32>
    %cst = arith.constant dense<0.000000e+00> : vector<4x256xf32>
    %3 = tpu.matmul %0, %2, %cst {dimension_numbers = #tpu.dot_dimension_numbers<[1], [0], [0], [1], [0, 0, 1, 1], [], []>} : vector<4x36xf32>, vector<36x256xf32>, vector<4x256xf32> -> vector<4x256xf32>
    %4 = vector.shape_cast %3 : vector<4x256xf32> to vector<1x4x256xf32>
    %c0_4 = arith.constant 0 : index
    %c0_5 = arith.constant 0 : index
    %c0_6 = arith.constant 0 : index
    %5 = vector.load %arg4[%c0_4, %c0_5, %c0_6] : memref<1x4x256xf32, #tpu.memory_space<vmem>>, vector<1x4x256xf32>
    tpu.vector_store %arg4[%c0_4, %c0_5, %c0_6], %4 {strides = array<i32>} : memref<1x4x256xf32, #tpu.memory_space<vmem>>, vector<1x4x256xf32>,
    %c0_i32 = arith.constant 0 : i32
    %6 = arith.cmpi eq, %arg1, %c0_i32 : i32
    %7 = arith.extui %6 : i1 to i32
    %c0_i32_7 = arith.constant 0 : i32
    %8 = arith.cmpi ne, %7, %c0_i32_7 : i32
    scf.if %8 {
      %cst_16 = arith.constant 0.000000e+00 : f32
      %19 = vector.broadcast %cst_16 : f32 to vector<1x4x2xf32>
      %c0_17 = arith.constant 0 : index
      %c0_18 = arith.constant 0 : index
      %c0_19 = arith.constant 0 : index
      %20 = vector.load %arg5[%c0_17, %c0_18, %c0_19] : memref<1x4x2xf32, #tpu.memory_space<vmem>>, vector<1x4x2xf32>
      tpu.vector_store %arg5[%c0_17, %c0_18, %c0_19], %19 {strides = array<i32>} : memref<1x4x2xf32, #tpu.memory_space<vmem>>, vector<1x4x2xf32>,
    } else {
    }
    %cst_8 = arith.constant dense<0.000000e+00> : vector<4xf32>
    %9 = vector.multi_reduction <add>, %3, %cst_8 [1] : vector<4x256xf32> to vector<4xf32>
    %10 = vector.shape_cast %9 : vector<4xf32> to vector<4x1xf32>
    %11 = arith.mulf %3, %3 : vector<4x256xf32>
    %cst_9 = arith.constant dense<0.000000e+00> : vector<4xf32>
    %12 = vector.multi_reduction <add>, %11, %cst_9 [1] : vector<4x256xf32> to vector<4xf32>
    %13 = vector.shape_cast %12 : vector<4xf32> to vector<4x1xf32>
    %c0_10 = arith.constant 0 : index
    %c0_11 = arith.constant 0 : index
    %c0_12 = arith.constant 0 : index
    %14 = vector.load %arg5[%c0_10, %c0_11, %c0_12] : memref<1x4x2xf32, #tpu.memory_space<vmem>>, vector<1x4x2xf32>
    %15 = tpu.concatenate %10, %13 in 1 : vector<4x1xf32>, vector<4x1xf32> -> vector<4x2xf32>
    %16 = vector.shape_cast %15 : vector<4x2xf32> to vector<1x4x2xf32>
    %17 = arith.addf %14, %16 : vector<1x4x2xf32>
    %c0_13 = arith.constant 0 : index
    %c0_14 = arith.constant 0 : index
    %c0_15 = arith.constant 0 : index
    %18 = vector.load %arg5[%c0_13, %c0_14, %c0_15] : memref<1x4x2xf32, #tpu.memory_space<vmem>>, vector<1x4x2xf32>
    tpu.vector_store %arg5[%c0_13, %c0_14, %c0_15], %17 {strides = array<i32>} : memref<1x4x2xf32, #tpu.memory_space<vmem>>, vector<1x4x2xf32>,
    return
  }
  func.func @transform_0(%arg0: i32, %arg1: i32) -> (i32, i32, i32) {
    %c0_i32 = arith.constant 0 : i32
    %c0_i32_0 = arith.constant 0 : i32
    return %arg0, %c0_i32, %arg1 : i32, i32, i32
  }
  func.func @transform_1(%arg0: i32, %arg1: i32) -> (i32, i32) {
    %c0_i32 = arith.constant 0 : i32
    %c0_i32_0 = arith.constant 0 : i32
    %c0_i32_1 = arith.constant 0 : i32
    return %c0_i32, %c0_i32_0 : i32, i32
  }
  func.func @transform_2(%arg0: i32, %arg1: i32) -> (i32, i32, i32) {
    %c0_i32 = arith.constant 0 : i32
    %c0_i32_0 = arith.constant 0 : i32
    return %arg0, %c0_i32, %arg1 : i32, i32, i32
  }
  func.func @transform_3(%arg0: i32, %arg1: i32) -> (i32, i32, i32) {
    %c0_i32 = arith.constant 0 : i32
    %c0_i32_0 = arith.constant 0 : i32
    %c0_i32_1 = arith.constant 0 : i32
    return %arg0, %c0_i32, %c0_i32_0 : i32, i32, i32
  }
}

module attributes {stable_mosaic.version = 11 : i64} {
  func.func @_bn_act_kernel(%arg0: i32, %arg1: memref<8x16x16xf32, #tpu.memory_space<vmem>>, %arg2: memref<8x1x1xf32, #tpu.memory_space<vmem>>, %arg3: memref<8x1x1xf32, #tpu.memory_space<vmem>>, %arg4: memref<16x32xf32, #tpu.memory_space<vmem>>, %arg5: memref<32x16xf32, #tpu.memory_space<vmem>>, %arg6: memref<32x16xf32, #tpu.memory_space<vmem>>, %arg7: memref<16x32xf32, #tpu.memory_space<vmem>>, %arg8: memref<8x16x16xf32, #tpu.memory_space<vmem>>) attributes {dimension_semantics = [#tpu.dimension_semantics<parallel>], iteration_bounds = array<i64: 1>, scalar_prefetch = 0 : i64, scratch_operands = 0 : i64, tpu.core_type = #tpu.core_type<tc>, window_params = [{transform_indices = @transform_0, window_bounds = array<i64: 8, 16, 16>}, {transform_indices = @transform_1, window_bounds = array<i64: 8, 1, 1>}, {transform_indices = @transform_2, window_bounds = array<i64: 8, 1, 1>}, {pipeline_mode = #tpu.pipeline_mode<synchronous>, transform_indices = @transform_3, window_bounds = array<i64: 16, 32>}, {pipeline_mode = #tpu.pipeline_mode<synchronous>, transform_indices = @transform_4, window_bounds = array<i64: 32, 16>}, {pipeline_mode = #tpu.pipeline_mode<synchronous>, transform_indices = @transform_5, window_bounds = array<i64: 32, 16>}, {pipeline_mode = #tpu.pipeline_mode<synchronous>, transform_indices = @transform_6, window_bounds = array<i64: 16, 32>}, {transform_indices = @transform_7, window_bounds = array<i64: 8, 16, 16>}]} {
    %c0 = arith.constant 0 : index
    %c0_0 = arith.constant 0 : index
    %c0_1 = arith.constant 0 : index
    %0 = vector.load %arg1[%c0, %c0_0, %c0_1] : memref<8x16x16xf32, #tpu.memory_space<vmem>>, vector<8x16x16xf32>
    %c0_2 = arith.constant 0 : index
    %c0_3 = arith.constant 0 : index
    %c0_4 = arith.constant 0 : index
    %1 = vector.load %arg2[%c0_2, %c0_3, %c0_4] : memref<8x1x1xf32, #tpu.memory_space<vmem>>, vector<8x1x1xf32>
    %2 = vector.broadcast %1 : vector<8x1x1xf32> to vector<8x16x16xf32>
    %3 = arith.mulf %0, %2 : vector<8x16x16xf32>
    %c0_5 = arith.constant 0 : index
    %c0_6 = arith.constant 0 : index
    %c0_7 = arith.constant 0 : index
    %4 = vector.load %arg3[%c0_5, %c0_6, %c0_7] : memref<8x1x1xf32, #tpu.memory_space<vmem>>, vector<8x1x1xf32>
    %5 = vector.broadcast %4 : vector<8x1x1xf32> to vector<8x16x16xf32>
    %6 = arith.addf %3, %5 : vector<8x16x16xf32>
    %c0_8 = arith.constant 0 : index
    %c0_9 = arith.constant 0 : index
    %7 = vector.load %arg4[%c0_8, %c0_9] : memref<16x32xf32, #tpu.memory_space<vmem>>, vector<16x32xf32>
    %8 = vector.shape_cast %7 : vector<16x32xf32> to vector<1x16x32xf32>
    %9 = vector.broadcast %8 : vector<1x16x32xf32> to vector<8x16x32xf32>
    "tpu.trace_start"() <{level = 10 : i32, message = "bHW,bWw->bHw"}> : () -> ()
    %cst = arith.constant dense<0.000000e+00> : vector<8x16x32xf32>
    %10 = tpu.matmul %6, %9, %cst {dimension_numbers = #tpu.dot_dimension_numbers<[2], [1], [1], [2], [0, 0, 0, 1, 1, 2], [0], [0]>} : vector<8x16x16xf32>, vector<8x16x32xf32>, vector<8x16x32xf32> -> vector<8x16x32xf32>
    "tpu.trace_stop"() : () -> ()
    %c0_10 = arith.constant 0 : index
    %c0_11 = arith.constant 0 : index
    %11 = vector.load %arg5[%c0_10, %c0_11] : memref<32x16xf32, #tpu.memory_space<vmem>>, vector<32x16xf32>
    %12 = vector.shape_cast %11 : vector<32x16xf32> to vector<1x32x16xf32>
    %13 = vector.broadcast %12 : vector<1x32x16xf32> to vector<8x32x16xf32>
    "tpu.trace_start"() <{level = 10 : i32, message = "bhH,bHw->bhw"}> : () -> ()
    %cst_12 = arith.constant dense<0.000000e+00> : vector<8x32x32xf32>
    %14 = tpu.matmul %13, %10, %cst_12 {dimension_numbers = #tpu.dot_dimension_numbers<[2], [1], [1], [2], [0, 0, 0, 1, 1, 2], [0], [0]>} : vector<8x32x16xf32>, vector<8x16x32xf32>, vector<8x32x32xf32> -> vector<8x32x32xf32>
    %cst_13 = arith.constant 0.000000e+00 : f32
    "tpu.trace_stop"() : () -> ()
    %15 = vector.broadcast %cst_13 : f32 to vector<8x32x32xf32>
    %16 = arith.cmpf oge, %14, %15 : vector<8x32x32xf32>
    %cst_14 = arith.constant 0.00999999977 : f32
    %17 = vector.broadcast %cst_14 : f32 to vector<8x32x32xf32>
    %18 = arith.mulf %17, %14 : vector<8x32x32xf32>
    %19 = arith.select %16, %14, %18 : vector<8x32x32xi1>, vector<8x32x32xf32>
    %c0_15 = arith.constant 0 : index
    %c0_16 = arith.constant 0 : index
    %20 = vector.load %arg6[%c0_15, %c0_16] : memref<32x16xf32, #tpu.memory_space<vmem>>, vector<32x16xf32>
    %21 = vector.shape_cast %20 : vector<32x16xf32> to vector<1x32x16xf32>
    %22 = vector.broadcast %21 : vector<1x32x16xf32> to vector<8x32x16xf32>
    "tpu.trace_start"() <{level = 10 : i32, message = "bhw,bwj->bhj"}> : () -> ()
    %cst_17 = arith.constant dense<0.000000e+00> : vector<8x32x16xf32>
    %23 = tpu.matmul %19, %22, %cst_17 {dimension_numbers = #tpu.dot_dimension_numbers<[2], [1], [1], [2], [0, 0, 0, 1, 1, 2], [0], [0]>} : vector<8x32x32xf32>, vector<8x32x16xf32>, vector<8x32x16xf32> -> vector<8x32x16xf32>
    "tpu.trace_stop"() : () -> ()
    %c0_18 = arith.constant 0 : index
    %c0_19 = arith.constant 0 : index
    %24 = vector.load %arg7[%c0_18, %c0_19] : memref<16x32xf32, #tpu.memory_space<vmem>>, vector<16x32xf32>
    %25 = vector.shape_cast %24 : vector<16x32xf32> to vector<1x16x32xf32>
    %26 = vector.broadcast %25 : vector<1x16x32xf32> to vector<8x16x32xf32>
    "tpu.trace_start"() <{level = 10 : i32, message = "bih,bhj->bij"}> : () -> ()
    %cst_20 = arith.constant dense<0.000000e+00> : vector<8x16x16xf32>
    %27 = tpu.matmul %26, %23, %cst_20 {dimension_numbers = #tpu.dot_dimension_numbers<[2], [1], [1], [2], [0, 0, 0, 1, 1, 2], [0], [0]>} : vector<8x16x32xf32>, vector<8x32x16xf32>, vector<8x16x16xf32> -> vector<8x16x16xf32>
    "tpu.trace_stop"() : () -> ()
    %c0_21 = arith.constant 0 : index
    %c0_22 = arith.constant 0 : index
    %c0_23 = arith.constant 0 : index
    %28 = vector.load %arg8[%c0_21, %c0_22, %c0_23] : memref<8x16x16xf32, #tpu.memory_space<vmem>>, vector<8x16x16xf32>
    tpu.vector_store %arg8[%c0_21, %c0_22, %c0_23], %27 {strides = array<i32>} : memref<8x16x16xf32, #tpu.memory_space<vmem>>, vector<8x16x16xf32>,
    return
  }
  func.func @transform_0(%arg0: i32) -> (i32, i32, i32) {
    %c0_i32 = arith.constant 0 : i32
    %c0_i32_0 = arith.constant 0 : i32
    %c0_i32_1 = arith.constant 0 : i32
    return %arg0, %c0_i32, %c0_i32_0 : i32, i32, i32
  }
  func.func @transform_1(%arg0: i32) -> (i32, i32, i32) {
    %c0_i32 = arith.constant 0 : i32
    %c0_i32_0 = arith.constant 0 : i32
    %c0_i32_1 = arith.constant 0 : i32
    return %arg0, %c0_i32, %c0_i32_0 : i32, i32, i32
  }
  func.func @transform_2(%arg0: i32) -> (i32, i32, i32) {
    %c0_i32 = arith.constant 0 : i32
    %c0_i32_0 = arith.constant 0 : i32
    %c0_i32_1 = arith.constant 0 : i32
    return %arg0, %c0_i32, %c0_i32_0 : i32, i32, i32
  }
  func.func @transform_3(%arg0: i32) -> (i32, i32) {
    %c0_i32 = arith.constant 0 : i32
    %c0_i32_0 = arith.constant 0 : i32
    %c0_i32_1 = arith.constant 0 : i32
    return %c0_i32, %c0_i32_0 : i32, i32
  }
  func.func @transform_4(%arg0: i32) -> (i32, i32) {
    %c0_i32 = arith.constant 0 : i32
    %c0_i32_0 = arith.constant 0 : i32
    %c0_i32_1 = arith.constant 0 : i32
    return %c0_i32, %c0_i32_0 : i32, i32
  }
  func.func @transform_5(%arg0: i32) -> (i32, i32) {
    %c0_i32 = arith.constant 0 : i32
    %c0_i32_0 = arith.constant 0 : i32
    %c0_i32_1 = arith.constant 0 : i32
    return %c0_i32, %c0_i32_0 : i32, i32
  }
  func.func @transform_6(%arg0: i32) -> (i32, i32) {
    %c0_i32 = arith.constant 0 : i32
    %c0_i32_0 = arith.constant 0 : i32
    %c0_i32_1 = arith.constant 0 : i32
    return %c0_i32, %c0_i32_0 : i32, i32
  }
  func.func @transform_7(%arg0: i32) -> (i32, i32, i32) {
    %c0_i32 = arith.constant 0 : i32
    %c0_i32_0 = arith.constant 0 : i32
    %c0_i32_1 = arith.constant 0 : i32
    return %arg0, %c0_i32, %c0_i32_0 : i32, i32, i32
  }
}

module attributes {stable_mosaic.version = 11 : i64} {
  func.func @_bn_res_kernel(%arg0: i32, %arg1: memref<1x4x256xf32, #tpu.memory_space<vmem>>, %arg2: memref<1x4x1xf32, #tpu.memory_space<vmem>>, %arg3: memref<1x4x1xf32, #tpu.memory_space<vmem>>, %arg4: memref<1x4x256xf32, #tpu.memory_space<vmem>>, %arg5: memref<1x4x256xf32, #tpu.memory_space<vmem>>) attributes {dimension_semantics = [#tpu.dimension_semantics<parallel>], iteration_bounds = array<i64: 2>, scalar_prefetch = 0 : i64, scratch_operands = 0 : i64, tpu.core_type = #tpu.core_type<tc>, window_params = [{transform_indices = @transform_0, window_bounds = array<i64: 1, 4, 256>}, {pipeline_mode = #tpu.pipeline_mode<synchronous>, transform_indices = @transform_1, window_bounds = array<i64: 1, 4, 1>}, {pipeline_mode = #tpu.pipeline_mode<synchronous>, transform_indices = @transform_2, window_bounds = array<i64: 1, 4, 1>}, {transform_indices = @transform_3, window_bounds = array<i64: 1, 4, 256>}, {transform_indices = @transform_4, window_bounds = array<i64: 1, 4, 256>}]} {
    %c0 = arith.constant 0 : index
    %c0_0 = arith.constant 0 : index
    %c0_1 = arith.constant 0 : index
    %0 = vector.load %arg4[%c0, %c0_0, %c0_1] : memref<1x4x256xf32, #tpu.memory_space<vmem>>, vector<1x4x256xf32>
    %c0_2 = arith.constant 0 : index
    %c0_3 = arith.constant 0 : index
    %c0_4 = arith.constant 0 : index
    %1 = vector.load %arg1[%c0_2, %c0_3, %c0_4] : memref<1x4x256xf32, #tpu.memory_space<vmem>>, vector<1x4x256xf32>
    %c0_5 = arith.constant 0 : index
    %c0_6 = arith.constant 0 : index
    %c0_7 = arith.constant 0 : index
    %2 = vector.load %arg2[%c0_5, %c0_6, %c0_7] : memref<1x4x1xf32, #tpu.memory_space<vmem>>, vector<1x4x1xf32>
    %3 = vector.broadcast %2 : vector<1x4x1xf32> to vector<1x4x256xf32>
    %4 = arith.mulf %1, %3 : vector<1x4x256xf32>
    %5 = arith.addf %0, %4 : vector<1x4x256xf32>
    %c0_8 = arith.constant 0 : index
    %c0_9 = arith.constant 0 : index
    %c0_10 = arith.constant 0 : index
    %6 = vector.load %arg3[%c0_8, %c0_9, %c0_10] : memref<1x4x1xf32, #tpu.memory_space<vmem>>, vector<1x4x1xf32>
    %7 = vector.broadcast %6 : vector<1x4x1xf32> to vector<1x4x256xf32>
    %8 = arith.addf %5, %7 : vector<1x4x256xf32>
    %c0_11 = arith.constant 0 : index
    %c0_12 = arith.constant 0 : index
    %c0_13 = arith.constant 0 : index
    %9 = vector.load %arg5[%c0_11, %c0_12, %c0_13] : memref<1x4x256xf32, #tpu.memory_space<vmem>>, vector<1x4x256xf32>
    tpu.vector_store %arg5[%c0_11, %c0_12, %c0_13], %8 {strides = array<i32>} : memref<1x4x256xf32, #tpu.memory_space<vmem>>, vector<1x4x256xf32>,
    return
  }
  func.func @transform_0(%arg0: i32) -> (i32, i32, i32) {
    %c0_i32 = arith.constant 0 : i32
    %c0_i32_0 = arith.constant 0 : i32
    %c0_i32_1 = arith.constant 0 : i32
    return %arg0, %c0_i32, %c0_i32_0 : i32, i32, i32
  }
  func.func @transform_1(%arg0: i32) -> (i32, i32, i32) {
    %c0_i32 = arith.constant 0 : i32
    %c0_i32_0 = arith.constant 0 : i32
    %c0_i32_1 = arith.constant 0 : i32
    %c0_i32_2 = arith.constant 0 : i32
    return %c0_i32, %c0_i32_0, %c0_i32_1 : i32, i32, i32
  }
  func.func @transform_2(%arg0: i32) -> (i32, i32, i32) {
    %c0_i32 = arith.constant 0 : i32
    %c0_i32_0 = arith.constant 0 : i32
    %c0_i32_1 = arith.constant 0 : i32
    %c0_i32_2 = arith.constant 0 : i32
    return %c0_i32, %c0_i32_0, %c0_i32_1 : i32, i32, i32
  }
  func.func @transform_3(%arg0: i32) -> (i32, i32, i32) {
    %c0_i32 = arith.constant 0 : i32
    %c0_i32_0 = arith.constant 0 : i32
    %c0_i32_1 = arith.constant 0 : i32
    return %arg0, %c0_i32, %c0_i32_0 : i32, i32, i32
  }
  func.func @transform_4(%arg0: i32) -> (i32, i32, i32) {
    %c0_i32 = arith.constant 0 : i32
    %c0_i32_0 = arith.constant 0 : i32
    %c0_i32_1 = arith.constant 0 : i32
    return %arg0, %c0_i32, %c0_i32_0 : i32, i32, i32
  }
}

</mosaic_0001>

<bundles_post_ra>
// kernel: tile.13
= control target key start
LH: loop header
LB: loop body
LE: loop exit
PB: predicated region body
PF: predicated region fallthrough
CT: control target
= control target key end

     0   :  { %s22_s0 = inlined_call_operand.vmem [shape: f32[4], index: 0, kind: input, shape index: {}]   ;;  %s23_s1 = inlined_call_operand.vmem [shape: f32[2,4], index: 1, kind: output, shape index: {}]  }
   0x1   :  { %v4_v0 = vld [vmem:[%s22_s0] ss:$0 sm:$0xff] }
   0x2   :  { %5 = vst [vmem:[%s23_s1] sm:$0x3] %v4_v0 }

// kernel: tile.0
= control target key start
LH: loop header
LB: loop body
LE: loop exit
PB: predicated region body
PF: predicated region fallthrough
CT: control target
= control target key end

     0   :  { %vm7_vm0 = vcmask 7168   ;;  %s99_s8 = smov 125   ;;  %s100_s9 = smov 126   ;;  %s146_s0 = inlined_call_operand.vmem [shape: f32[2,4], index: 0, kind: input, shape index: {}]   ;;  %s147_s1 = inlined_call_operand.vmem [shape: f32[8,1,1], index: 1, kind: output, shape index: {}]  }
   0x1   :  { %v4_v0 = vld [vmem:[%s146_s0] sm:$0x3]  ;;  %s98_s0 = smov 127  }
   0x2   :  { %5 = vst [vmem:[#allocation1] sm:$0x3] %v4_v0 }
   0x9   :  { %v11_v1 = vld [vmem:[#allocation1] sm:$0x3]  }
   0xa   :  { %v6_v2 = vld [vmem:[#allocation1] sm:$0x3]   ;;  %12 = vrot.lane.b32.xlu0 %v11_v1, %s98_s0 }
   0xb   :  { %v27_v3 = vld [vmem:[#allocation1] sm:$0x3]   ;;  %8 = vst.msk [vmem:[#allocation0] sm:$0x1] %vm7_vm0, %v6_v2   ;;  %10 = vst.msk [vmem:[#allocation0 + $0x1f] sm:$0x2] %vm7_vm0, %v6_v2  }
   0xc   :  { %28 = vrot.lane.b32.xlu1 %v27_v3, %s99_s8  ;;  %v19_v4 = vld [vmem:[#allocation1] sm:$0x3]  }
   0xe   :  { %20 = vrot.lane.b32.xlu0 %v19_v4, %s100_s9 }
  0x12   :  { %v38_v5 = vld [vmem:[#allocation0] sm:$0x1] }
  0x13   :  { %v59_v6 = vld [vmem:[#allocation0 + $0x20] sm:$0x1]  ;;  %40 = vst [vmem:[%s147_s1] sm:$0x1] %v38_v5 }
  0x14   :  { %91 = vst [vmem:[%s147_s1 + $0x4] sm:$0x1] %v59_v6 }
  0x7c   :  { %v13_v7 = vpop.permute.xlu0 %12  }
  0x7d   :  { %16 = vst.msk [vmem:[#allocation0 + $0x8] sm:$0x1] %vm7_vm0, %v13_v7   ;;  %18 = vst.msk [vmem:[#allocation0 + $0x27] sm:$0x2] %vm7_vm0, %v13_v7  }
  0x7e   :  { %v29_v8 = vpop.permute.xlu1 %28  }
  0x7f   :  { %32 = vst.msk [vmem:[#allocation0 + $0x18] sm:$0x1] %vm7_vm0, %v29_v8   ;;  %34 = vst.msk [vmem:[#allocation0 + $0x37] sm:$0x2] %vm7_vm0, %v29_v8  }
  0x80   :  { %v21_v9 = vpop.permute.xlu0 %20  }
  0x81   :  { %24 = vst.msk [vmem:[#allocation0 + $0x10] sm:$0x1] %vm7_vm0, %v21_v9   ;;  %26 = vst.msk [vmem:[#allocation0 + $0x2f] sm:$0x2] %vm7_vm0, %v21_v9  }
  0x84   :  { %v42_v10 = vld [vmem:[#allocation0 + $0x8] sm:$0x1] }
  0x85   :  { %v65_v11 = vld [vmem:[#allocation0 + $0x28] sm:$0x1]  ;;  %88 = vst [vmem:[%s147_s1 + $0x1] sm:$0x1] %v42_v10 }
  0x86   :  { %v53_v12 = vld [vmem:[#allocation0 + $0x18] sm:$0x1]  ;;  %92 = vst [vmem:[%s147_s1 + $0x5] sm:$0x1] %v65_v11 }
  0x87   :  { %90 = vst [vmem:[%s147_s1 + $0x3] sm:$0x1] %v53_v12  ;;  %v77_v13 = vld [vmem:[#allocation0 + $0x38] sm:$0x1] }
  0x88   :  { %94 = vst [vmem:[%s147_s1 + $0x7] sm:$0x1] %v77_v13  ;;  %v47_v14 = vld [vmem:[#allocation0 + $0x10] sm:$0x1] }
  0x89   :  { %v71_v15 = vld [vmem:[#allocation0 + $0x30] sm:$0x1]  ;;  %89 = vst [vmem:[%s147_s1 + $0x2] sm:$0x1] %v47_v14 }
  0x8a   :  { %93 = vst [vmem:[%s147_s1 + $0x6] sm:$0x1] %v71_v15 }

// kernel: residual_block_forward.4
= control target key start
LH: loop header
LB: loop body
LE: loop exit
PB: predicated region body
PF: predicated region fallthrough
CT: control target
= control target key end

     0   :  { %s555_s12 = smov 0   ;;  %s557_s13 = smov 0   ;;  %s612_s0 = inlined_call_operand.vmem [shape: f32[2,36,256], index: 0, kind: input, shape index: {}]   ;;  %s613_s1 = inlined_call_operand.vmem [shape: f32[4,36], index: 1, kind: input, shape index: {}]   ;;  %s614_s2 = inlined_call_operand.vmem [shape: f32[2,4,256], index: 2, kind: output, shape index: {0}]   ;;  %s615_s3 = inlined_call_operand.vmem [shape: f32[2,4,2], index: 3, kind: output, shape index: {1}]  }
   0x1   :  { %s559_s14 = smov 0  }
   0x2 LB: > { %s26_s15 = sadd.s32 1, %s528_s13  ;;  %p465_p0 = scmp.ge.s32.totalorder %s532_s14, 1  ;;  %s532_s14 = sphi %s559_s14, %s14_s14   ;;  %s528_s13 = sphi %s557_s13, %s617_s13   ;;  %s524_s12 = sphi %s555_s12, %s616_s12  }
   0x3   : > { %p28_p1 = scmp.ge.s32.totalorder %s26_s15, 2  ;;  %p161_p2 = scmp.lt.s32.totalorder %s532_s14, 3 }
   0x5   : > { %s619_s15 = smov (%p28_p1, %s26_s15), 0  ;;  %p162_p3 = pnand %p465_p0, %p161_p2 }
   0x6   : > { %p198_p4 = scmp.lt.s32.totalorder (!%p162_p3), %s524_s12, 1  ;;  %v534_v0 = vmov (!%p162_p3), 0.0   ;;  %vm323_vm0 = vcmask (!%p162_p3), 11264   ;;  %vm236_vm1 = vcmask (!%p162_p3), 1043456   ;;  %v221_v15 = vld [vmem:[%s613_s1] sm:$0xf] (!%p162_p3) }
   0x7   : > { %165 = sbr.rel (%p162_p3) target bundleno = 397 (0x18d), region = 28  ;;  %307 = vmatprep.mubr.f32.mxu0 (!%p162_p3), %v534_v0  ;;  %vm232_vm2 = vcmask (!%p162_p3), 293888   ;;  %vm338_vm3 = vcmask (!%p162_p3), 7168  }
   0xe   : > { %s621_s12 = smov (!%p198_p4, %s524_s12), 1 }
   0xf   : > { %s484_s16 = smul.u32 80, %s621_s12  ;;  %s469_s17 = sshll.u32 %s621_s12, 2 }
  0x10   : > { %s580_s20 = scalar_lea.vmem %s615_s3, %s469_s17  ;;  %s475_s26 = sshll.u32 %s621_s12, 3 }
  0x11   : > { %s205_s23 = scalar_lea.vmem %s612_s0, %s484_s16  ;;  %324 = vst.msk [vmem:[%s580_s20] sm:$0xf] %vm323_vm0, %v534_v0  ;;  %s215_s29 = scalar_lea.vmem %s614_s2, %s475_s26 }
  0x12   : > { %v223_v1 = vld [vmem:[%s205_s23 + $0x8] sm:$0xff]  ;;  %v225_v2 = vld [vmem:[%s205_s23 + $0x18] sm:$0xff]  ;;  %v222_v3 = vld [vmem:[%s205_s23] sm:$0xff] }
  0x13   : > { %v476_v4 = vpack.c.bf16 %v225_v2, %v223_v1  ;;  %v224_v5 = vld [vmem:[%s205_s23 + $0x10] sm:$0xff]  ;;  %v227_v6 = vld [vmem:[%s205_s23 + $0x28] sm:$0xff]  ;;  %v229_v7 = vld [vmem:[%s205_s23 + $0x38] sm:$0xff] }
  0x14   : > { %v478_v8 = vpack.c.bf16 %v224_v5, %v222_v3  ;;  %v480_v9 = vpack.c.bf16 %v229_v7, %v227_v6  ;;  %v226_v10 = vld [vmem:[%s205_s23 + $0x20] sm:$0xff]  ;;  %v228_v11 = vld [vmem:[%s205_s23 + $0x30] sm:$0xff]  ;;  %v231_v13 = vld [vmem:[%s205_s23 + $0x48] sm:$0xf] }
  0x15   : > { %477 = vmatprep.subr.bf16.mxu0 %v476_v4  ;;  %v482_v12 = vpack.c.bf16 %v228_v11, %v226_v10  ;;  %v230_v14 = vld [vmem:[%s205_s23 + $0x40] sm:$0xf] }
  0x16   : > { %479 = vmatpush1.bf16.msra.mxu0 %v478_v8 }
  0x17   : > { %481 = vmatprep.subr.bf16.mxu0 %v480_v9 }
  0x18   : > { %v337_v28 = vld [vmem:[%s580_s20] sm:$0xf] }
  0x1a   : > { %483 = vmatpush1.bf16.msra.mxu0 %v482_v12 }
  0x1b   : > { %470 = vmatprep.subr.msk.mxu0 %vm236_vm1, %v231_v13 }
  0x1e   : > { %471 = vmatpush1.msk.msra.mxu0 %vm236_vm1, %v230_v14 }
  0x1f   : > { %472 = vmatmul.mubr.msk.f32.vlgmr.msra.gmra.mrb[0].mxu0 %vm232_vm2, %v221_v15 }
  0xf2   : > { %v309_v16 = vpop.f32.mrb[0].mxu0 }
  0xf3   : > { %v330_v17 = vmul.f32 %v309_v16, %v309_v16  ;;  %v311_v18 = vpop.f32.mrb[1].mxu0  ;;  %v325_v19 = vsel %vm236_vm1, %v309_v16, 0.0 }
  0xf4   : > { %v316_v20 = vcombine.low %v309_v16, %v311_v18  ;;  %v331_v21 = vmul.f32 %v311_v18, %v311_v18  ;;  %v326_v22 = vsel %vm236_vm1, %v311_v18, 0.0 }
  0xf5   : > { %v327_v23 = vadd.f32 %v326_v22, %v325_v19  ;;  %v332_v24 = vsel %vm236_vm1, %v330_v17, 0.0 }
  0xf6   : > { %318 = vst [vmem:[%s215_s29] sm:$0xff] %v316_v20  ;;  %v333_v25 = vsel %vm236_vm1, %v331_v21, 0.0 }
  0xf7   : > { %328 = vadd.xlane.f32.xlu0 %v327_v23  ;;  %v334_v26 = vadd.f32 %v333_v25, %v332_v24 }
  0xfb   : > { %335 = vadd.xlane.f32.xlu0 %v334_v26 }
 0x184   : > { %v329_v27 = vpop.xlane.xlu0 %328 }
 0x188   : > { %v336_v29 = vpop.xlane.xlu0 %335 }
 0x189   : > { %v339_v30 = vsel %vm338_vm3, %v329_v27, %v336_v29 }
 0x18a   : > { %v340_v31 = vadd.f32 %v339_v30, %v337_v28 }
 0x18c   : > { %342 = vst.msk [vmem:[%s580_s20] sm:$0xf] %vm323_vm0, %v340_v31 }
 0x18d PF: > { %s14_s14 = sadd.s32 1, %s532_s14   ;;  %s616_s12 = smov %s528_s13 }
 0x18e   : > { %p11_p5 = scmp.ge.s32.totalorder %s14_s14, 4   ;;  %s617_s13 = smov %s619_s15 }
 0x190   :  { %13 = sbr.rel (!%p11_p5) target bundleno = 2 (0x2), region = 74 }

// kernel: residual_block_forward.7
= control target key start
LH: loop header
LB: loop body
LE: loop exit
PB: predicated region body
PF: predicated region fallthrough
CT: control target
= control target key end

     0   :  { %s379_s15 = smov 0   ;;  %s405_s0 = inlined_call_operand.vmem [shape: f32[2,4,256], index: 0, kind: input, shape index: {}]   ;;  %s406_s1 = inlined_call_operand.vmem [shape: f32[1,4,1], index: 1, kind: input, shape index: {}]   ;;  %s407_s2 = inlined_call_operand.vmem [shape: f32[1,4,1], index: 2, kind: input, shape index: {}]   ;;  %s408_s3 = inlined_call_operand.vmem [shape: f32[2,4,256], index: 3, kind: input, shape index: {}]   ;;  %s409_s4 = inlined_call_operand.vmem [shape: f32[2,4,256], index: 4, kind: output, shape index: {}]  }
   0x1 LB: > { %s317_s16 = sadd.s32 4294967295, %s350_s15   ;;  %p321_p0 = scmp.ge.s32.totalorder %s350_s15, 1  ;;  %s350_s15 = sphi %s379_s15, %s14_s15  }
   0x2   : > { %p172_p1 = scmp.lt.s32.totalorder %s350_s15, 3 }
   0x4   : > { %p173_p2 = pnand %p321_p0, %p172_p1 }
   0x5   : > { %v220_v0 = vld [vmem:[%s406_s1] sm:$0xf] (!%p173_p2)  ;;  %v352_v1 = vmov (!%p173_p2), 0   ;;  %p203_p3 = scmp.lt.s32.totalorder (!%p173_p2), %s317_s16, 1  ;;  %v353_v3 = vmov (!%p173_p2), 839922192   ;;  %v228_v5 = vlaneseq (!%p173_p2) }
   0x6   : > { %176 = sbr.rel (%p173_p2) target bundleno = 144 (0x90), region = 36  ;;  %343 = vset.pattern.permute.xlu0 (!%p173_p2), %v352_v1  ;;  %v235_v2 = vld [vmem:[%s407_s2] sm:$0xf] (!%p173_p2)  ;;  %v226_v4 = vunpack.c.l.s4 (!%p173_p2), %v353_v3 }
   0x7   : > { %223 = vperm.xlu0 (!%p173_p2), %343, %v220_v0   ;;  %v229_v7 = vshrl.u32 (!%p173_p2), %v228_v5, 7 }
   0x8   : > { %v227_v6 = vunpack.c.0.s8 (!%p173_p2), %v226_v4 }
   0xa   : > { %v230_v8 = vsub.s32 (!%p173_p2), %v227_v6, %v229_v7 }
   0xb   : > { %238 = vperm.xlu0 (!%p173_p2), %343, %v235_v2  }
   0xd   : > { %s411_s16 = smov (!%p203_p3, %s317_s16), 1 }
   0xe   : > { %s330_s21 = sshll.u32 %s411_s16, 3 }
   0xf   : > { %s207_s24 = scalar_lea.vmem %s405_s0, %s330_s21  ;;  %s212_s27 = scalar_lea.vmem %s408_s3, %s330_s21 }
  0x10   : > { %v219_v10 = vld [vmem:[%s207_s24] sm:$0xff]  ;;  %s217_s30 = scalar_lea.vmem %s409_s4, %s330_s21 }
  0x11   : > { %v218_v12 = vld [vmem:[%s212_s27] sm:$0xff] }
  0x86   : > { %v224_v9 = vpop.permute.xlu0 %223 }
  0x87   : > { %v231_v11 = vrot.slane %v224_v9, %v230_v8 }
  0x89   : > { %v233_v13 = vmul.f32 %v231_v11, %v219_v10 }
  0x8a   : > { %v239_v14 = vpop.permute.xlu0 %238 }
  0x8b   : > { %v234_v15 = vadd.f32 %v233_v13, %v218_v12  ;;  %v246_v16 = vrot.slane %v239_v14, %v230_v8 }
  0x8d   : > { %v248_v17 = vadd.f32 %v246_v16, %v234_v15 }
  0x8f   : > { %249 = vst [vmem:[%s217_s30] sm:$0xff] %v248_v17 }
  0x90 PF: > { %s14_s15 = sadd.s32 1, %s350_s15  }
  0x91   : > { %p11_p4 = scmp.ge.s32.totalorder %s14_s15, 4  }
  0x93   :  { %13 = sbr.rel (!%p11_p4) target bundleno = 1 (0x1), region = 69 }

// kernel: residual_block_forward.5
= control target key start
LH: loop header
LB: loop body
LE: loop exit
PB: predicated region body
PF: predicated region fallthrough
CT: control target
= control target key end

     0   :  { %v3921_v0 = vmov 0   ;;  %vm236_vm0 = vcmask 130048   ;;  %vm1681_vm3 = vcmask 261120   ;;  %s4383_s2 = inlined_call_operand.vmem [shape: f32[8,1,1], index: 2, kind: input, shape index: {}]   ;;  %s4384_s1 = inlined_call_operand.vmem [shape: f32[8,1,1], index: 1, kind: input, shape index: {}]   ;;  %s4385_s3 = inlined_call_operand.vmem [shape: f32[16,32], index: 3, kind: input, shape index: {}]   ;;  %s4386_s0 = inlined_call_operand.vmem [shape: f32[8,16,16], index: 0, kind: input, shape index: {}]   ;;  %s4387_s4 = inlined_call_operand.vmem [shape: f32[32,16], index: 4, kind: input, shape index: {}]   ;;  %s4388_s5 = inlined_call_operand.vmem [shape: f32[32,16], index: 5, kind: input, shape index: {}]   ;;  %s4389_s6 = inlined_call_operand.vmem [shape: f32[16,32], index: 6, kind: input, shape index: {}]   ;;  %s4390_s7 = inlined_call_operand.vmem [shape: f32[8,16,16], index: 7, kind: output, shape index: {}]  }
   0x1   :  { %3920 = vset.pattern.permute.xlu1 %v3921_v0  ;;  %3919 = vset.pattern.permute.xlu0 %v3921_v0  ;;  %v3094_v1 = vld [vmem:[%s4383_s2] ss:$0 sm:$0xff]  ;;  %v3095_v3 = vld [vmem:[%s4383_s2 + $0x1] ss:$0 sm:$0xff]  ;;  %v3089_v5 = vld [vmem:[%s4384_s1 + $0x3] ss:$0 sm:$0xff] }
   0x2   :  { %v3086_v2 = vld [vmem:[%s4384_s1] ss:$0 sm:$0xff]  ;;  %187 = vperm.xlu1 %3920, %v3094_v1   ;;  %v3087_v4 = vld [vmem:[%s4384_s1 + $0x1] ss:$0 sm:$0xff]  ;;  %v3088_v6 = vld [vmem:[%s4384_s1 + $0x2] ss:$0 sm:$0xff] }
   0x3   :  { %91 = vperm.xlu0 %3919, %v3086_v2   ;;  %v234_v7 = vld [vmem:[%s4385_s3] sm:$0xff]  ;;  %v235_v8 = vld [vmem:[%s4385_s3 + $0x8] sm:$0xff]  ;;  %v28_v26 = vld [vmem:[%s4386_s0 + $0x10] sm:$0xff] }
   0x4   :  { %v3986_v9 = vpack.c.bf16 %v235_v8, %v234_v7  ;;  %v3097_v10 = vld [vmem:[%s4383_s2 + $0x3] ss:$0 sm:$0xff]  ;;  %v3096_v11 = vld [vmem:[%s4383_s2 + $0x2] ss:$0 sm:$0xff]  ;;  %v3091_v12 = vld [vmem:[%s4384_s1 + $0x5] ss:$0 sm:$0xff] }
   0x5   :  { %v3090_v13 = vld [vmem:[%s4384_s1 + $0x4] ss:$0 sm:$0xff]  ;;  %v3099_v14 = vld [vmem:[%s4383_s2 + $0x5] ss:$0 sm:$0xff]  ;;  %v3093_v16 = vld [vmem:[%s4384_s1 + $0x7] ss:$0 sm:$0xff] }
   0x6   :  { %191 = vperm.xlu1 %3920, %v3095_v3   ;;  %3727 = vmatprep.subr.bf16.mxu0 %v3986_v9  ;;  %v3098_v15 = vld [vmem:[%s4383_s2 + $0x4] ss:$0 sm:$0xff]  ;;  %v3092_v17 = vld [vmem:[%s4384_s1 + $0x6] ss:$0 sm:$0xff]  ;;  %v3101_v18 = vld [vmem:[%s4383_s2 + $0x7] ss:$0 sm:$0xff] }
   0x7   :  { %95 = vperm.xlu0 %3919, %v3087_v4   ;;  %3731 = vmatprep.subr.bf16.mxu1 %v3986_v9  ;;  %v3100_v19 = vld [vmem:[%s4383_s2 + $0x6] ss:$0 sm:$0xff]  ;;  %v27_v21 = vld [vmem:[%s4386_s0 + $0x8] sm:$0xff]  ;;  %v29_v27 = vld [vmem:[%s4386_s0 + $0x18] sm:$0xff] }
   0x8   :  { %3729 = vmatpush3.bf16.msra.mxu0 %v3986_v9  ;;  %3733 = vmatpush3.bf16.msra.mxu1 %v3986_v9  ;;  %v26_v20 = vld [vmem:[%s4386_s0] sm:$0xff]  ;;  %v32_v35 = vld [vmem:[%s4386_s0 + $0x30] sm:$0xff]  ;;  %v33_v38 = vld [vmem:[%s4386_s0 + $0x38] sm:$0xff] }
   0x9   :  { %3735 = vmatprep.subr.bf16.mxu0 %v3986_v9  ;;  %3739 = vmatprep.subr.bf16.mxu1 %v3986_v9  ;;  %v30_v40 = vld [vmem:[%s4386_s0 + $0x20] sm:$0xff]  ;;  %v31_v41 = vld [vmem:[%s4386_s0 + $0x28] sm:$0xff]  ;;  %v36_v52 = vld [vmem:[%s4386_s0 + $0x50] sm:$0xff] }
   0xa   :  { %103 = vperm.xlu1 %3920, %v3089_v5   ;;  %v37_v54 = vld [vmem:[%s4386_s0 + $0x58] sm:$0xff]  ;;  %v34_v56 = vld [vmem:[%s4386_s0 + $0x40] sm:$0xff]  ;;  %v35_v57 = vld [vmem:[%s4386_s0 + $0x48] sm:$0xff] }
   0xb   :  { %99 = vperm.xlu0 %3919, %v3088_v6   ;;  %v40_v4 = vld [vmem:[%s4386_s0 + $0x70] sm:$0xff]  ;;  %v41_v6 = vld [vmem:[%s4386_s0 + $0x78] sm:$0xff]  ;;  %v38_v8 = vld [vmem:[%s4386_s0 + $0x60] sm:$0xff] }
   0xe   :  { %199 = vperm.xlu1 %3920, %v3097_v10   ;;  %v39_v10 = vld [vmem:[%s4386_s0 + $0x68] sm:$0xff] }
   0xf   :  { %195 = vperm.xlu0 %3919, %v3096_v11  }
  0x12   :  { %111 = vperm.xlu1 %3920, %v3091_v12  }
  0x13   :  { %107 = vperm.xlu0 %3919, %v3090_v13  }
  0x16   :  { %207 = vperm.xlu1 %3920, %v3099_v14  }
  0x17   :  { %203 = vperm.xlu0 %3919, %v3098_v15  }
  0x1a   :  { %119 = vperm.xlu1 %3920, %v3093_v16  }
  0x1b   :  { %115 = vperm.xlu0 %3919, %v3092_v17  }
  0x1e   :  { %215 = vperm.xlu1 %3920, %v3101_v18  }
  0x1f   :  { %211 = vperm.xlu0 %3919, %v3100_v19  }
  0x81   :  { %v188_v22 = vpop.permute.xlu1 %187 }
  0x82   :  { %v92_v23 = vpop.permute.xlu0 %91 }
  0x83   :  { %v122_v24 = vmul.f32 %v92_v23, %v26_v20  ;;  %v123_v25 = vmul.f32 %v92_v23, %v27_v21 }
  0x85   :  { %v219_v28 = vadd.f32 %v188_v22, %v123_v25  ;;  %v218_v29 = vadd.f32 %v188_v22, %v122_v24  ;;  %v192_v30 = vpop.permute.xlu1 %191 }
  0x86   :  { %v96_v31 = vpop.permute.xlu0 %95 }
  0x87   :  { %v124_v32 = vmul.f32 %v96_v31, %v28_v26  ;;  %v125_v33 = vmul.f32 %v96_v31, %v29_v27  ;;  %3394 = vmatprep.mubr.msk.f32.mxu0 %vm236_vm0, %v218_v29  ;;  %v4110_v26 = vld [vmem:[%s4387_s4 + $0x8] sm:$0xff]  ;;  %v4124_v29 = vld [vmem:[%s4387_s4 + $0x18] sm:$0xff] }
  0x88   :  { %3395 = vmatmul.mubr.msk.f32.vlgmr.msra.gmra.mrb[0].mxu0 %vm236_vm0, %v219_v28  ;;  %v4115_v28 = vld [vmem:[%s4387_s4 + $0x10] sm:$0xff] }
  0x89   :  { %v221_v34 = vadd.f32 %v192_v30, %v125_v33  ;;  %v220_v36 = vadd.f32 %v192_v30, %v124_v32  ;;  %3737 = vmatpush3.bf16.msra.mxu0 %v3986_v9  ;;  %v104_v37 = vpop.permute.xlu1 %103 }
  0x8a   :  { %v100_v39 = vpop.permute.xlu0 %99  ;;  %3743 = vmatprep.subr.bf16.mxu0 %v3986_v9  ;;  %v128_v42 = vmul.f32 %v104_v37, %v32_v35  ;;  %v129_v43 = vmul.f32 %v104_v37, %v33_v38 }
  0x8b   :  { %3401 = vmatprep.mubr.msk.f32.mxu1 %vm236_vm0, %v220_v36  ;;  %v126_v44 = vmul.f32 %v100_v39, %v30_v40  ;;  %v127_v45 = vmul.f32 %v100_v39, %v31_v41 }
  0x8c   :  { %3402 = vmatmul.mubr.msk.f32.vlgmr.msra.gmra.mrb[0].mxu1 %vm236_vm0, %v221_v34 }
  0x8d   :  { %3741 = vmatpush3.bf16.msra.mxu1 %v3986_v9  ;;  %v200_v46 = vpop.permute.xlu1 %199 }
  0x8e   :  { %v196_v47 = vpop.permute.xlu0 %195  ;;  %3747 = vmatprep.subr.bf16.mxu1 %v3986_v9  ;;  %v224_v48 = vadd.f32 %v200_v46, %v128_v42  ;;  %v225_v49 = vadd.f32 %v200_v46, %v129_v43  ;;  %v1677_v46 = vld [vmem:[%s4388_s5] sm:$0xff] }
  0x8f   :  { %v222_v50 = vadd.f32 %v196_v47, %v126_v44  ;;  %v223_v51 = vadd.f32 %v196_v47, %v127_v45  ;;  %v1678_v47 = vld [vmem:[%s4388_s5 + $0x8] sm:$0xff] }
  0x90   :  { %3415 = vmatprep.mubr.msk.f32.mxu1 %vm236_vm0, %v224_v48 }
  0x91   :  { %3408 = vmatprep.mubr.msk.f32.mxu0 %vm236_vm0, %v222_v50  ;;  %v112_v53 = vpop.permute.xlu1 %111  ;;  %3416 = vmatmul.mubr.msk.f32.vlgmr.msra.gmra.mrb[2].mxu1 %vm236_vm0, %v225_v49  ;;  %v4168_v50 = vpack.c.bf16 %v1678_v47, %v1677_v46 }
  0x92   :  { %v108_v55 = vpop.permute.xlu0 %107  ;;  %3409 = vmatmul.mubr.msk.f32.vlgmr.msra.gmra.mrb[2].mxu0 %vm236_vm0, %v223_v51  ;;  %3749 = vmatpush3.bf16.msra.mxu1 %v3986_v9  ;;  %v132_v58 = vmul.f32 %v112_v53, %v36_v52  ;;  %v133_v59 = vmul.f32 %v112_v53, %v37_v54  ;;  %v1679_v51 = vld [vmem:[%s4388_s5 + $0x10] sm:$0xff]  ;;  %v1680_v52 = vld [vmem:[%s4388_s5 + $0x18] sm:$0xff] }
  0x93   :  { %3745 = vmatpush3.bf16.msra.mxu0 %v3986_v9  ;;  %v130_v60 = vmul.f32 %v108_v55, %v34_v56  ;;  %v131_v61 = vmul.f32 %v108_v55, %v35_v57  ;;  %3755 = vmatprep.subr.bf16.mxu1 %v3986_v9  ;;  %v4200_v53 = vpack.c.bf16 %v1680_v52, %v1679_v51 }
  0x94   :  { %3751 = vmatprep.subr.bf16.mxu0 %v3986_v9 }
  0x95   :  { %v208_v62 = vpop.permute.xlu1 %207 }
  0x96   :  { %v204_v63 = vpop.permute.xlu0 %203  ;;  %v228_v0 = vadd.f32 %v208_v62, %v132_v58  ;;  %v229_v1 = vadd.f32 %v208_v62, %v133_v59 }
  0x97   :  { %v226_v2 = vadd.f32 %v204_v63, %v130_v60  ;;  %v227_v3 = vadd.f32 %v204_v63, %v131_v61 }
  0x98   :  { %3429 = vmatprep.mubr.msk.f32.mxu1 %vm236_vm0, %v228_v0 }
  0x99   :  { %3422 = vmatprep.mubr.msk.f32.mxu0 %vm236_vm0, %v226_v2  ;;  %v120_v5 = vpop.permute.xlu1 %119  ;;  %3430 = vmatmul.mubr.msk.f32.vlgmr.msra.gmra.mrb[4].mxu1 %vm236_vm0, %v229_v1 }
  0x9a   :  { %v116_v7 = vpop.permute.xlu0 %115  ;;  %3423 = vmatmul.mubr.msk.f32.vlgmr.msra.gmra.mrb[4].mxu0 %vm236_vm0, %v227_v3  ;;  %3757 = vmatpush3.bf16.msra.mxu1 %v3986_v9  ;;  %v136_v11 = vmul.f32 %v120_v5, %v40_v4  ;;  %v137_v12 = vmul.f32 %v120_v5, %v41_v6 }
  0x9b   :  { %3753 = vmatpush3.bf16.msra.mxu0 %v3986_v9  ;;  %v134_v13 = vmul.f32 %v116_v7, %v38_v8  ;;  %v135_v14 = vmul.f32 %v116_v7, %v39_v10  ;;  %v4101_v9 = vld [vmem:[%s4387_s4] sm:$0xff] }
  0x9d   :  { %v216_v15 = vpop.permute.xlu1 %215 }
  0x9e   :  { %v212_v16 = vpop.permute.xlu0 %211  ;;  %v232_v17 = vadd.f32 %v216_v15, %v136_v11  ;;  %v233_v18 = vadd.f32 %v216_v15, %v137_v12 }
  0x9f   :  { %v230_v19 = vadd.f32 %v212_v16, %v134_v13  ;;  %v231_v20 = vadd.f32 %v212_v16, %v135_v14 }
  0xa0   :  { %3443 = vmatprep.mubr.msk.f32.mxu1 %vm236_vm0, %v232_v17 }
  0xa1   :  { %3436 = vmatprep.mubr.msk.f32.mxu0 %vm236_vm0, %v230_v19  ;;  %3444 = vmatmul.mubr.msk.f32.vlgmr.msra.gmra.mrb[6].mxu1 %vm236_vm0, %v233_v18 }
  0xa2   :  { %3437 = vmatmul.mubr.msk.f32.vlgmr.msra.gmra.mrb[6].mxu0 %vm236_vm0, %v231_v20  ;;  %3460 = vmatprep.mubr.msk.f32.mxu1 %vm236_vm0, %v4101_v9 }
  0xa3   :  { %3450 = vmatprep.mubr.msk.f32.mxu0 %vm236_vm0, %v4101_v9 }
 0x15b   :  { %v3396_v21 = vpop.f32.mrb[0].mxu0 }
 0x15c   :  { %v309_v22 = vpop.f32.mrb[1].mxu0 }
 0x15d   :  { %v3758_v23 = vpack.c.bf16 %v3396_v21, %v309_v22 }
 0x15f   :  { %v3403_v24 = vpop.f32.mrb[0].mxu1  ;;  %3759 = vmatprep.subr.bf16.mxu0 %v3758_v23 }
 0x160   :  { %v390_v25 = vpop.f32.mrb[1].mxu1  ;;  %3761 = vmatpush3.bf16.msra.mxu0 %v3758_v23 }
 0x161   :  { %v3762_v27 = vpack.c.bf16 %v3403_v24, %v390_v25 }
 0x163   :  { %3763 = vmatprep.subr.bf16.mxu1 %v3762_v27  ;;  %3451 = vmatmul.mubr.msk.f32.vlgmr.msra.gmra.mrb[8].mxu0 %vm236_vm0, %v4110_v26 }
 0x164   :  { %3765 = vmatpush3.bf16.msra.mxu1 %v3762_v27  ;;  %3453 = vmatprep.mubr.msk.f32.mxu0 %vm236_vm0, %v4115_v28  ;;  %v3417_v31 = vpop.f32.mrb[2].mxu1 }
 0x165   :  { %v3410_v30 = vpop.f32.mrb[2].mxu0  ;;  %v552_v33 = vpop.f32.mrb[3].mxu1 }
 0x166   :  { %v471_v32 = vpop.f32.mrb[3].mxu0  ;;  %v3770_v35 = vpack.c.bf16 %v3417_v31, %v552_v33 }
 0x167   :  { %v3766_v34 = vpack.c.bf16 %v3410_v30, %v471_v32  ;;  %3461 = vmatmul.mubr.msk.f32.vlgmr.msra.gmra.mrb[8].mxu1 %vm236_vm0, %v4110_v26  ;;  %3454 = vmatmul.mubr.msk.f32.gmra.mrb[10].mxu0 %vm236_vm0, %v4124_v29 }
 0x168   :  { %3463 = vmatprep.mubr.msk.f32.mxu1 %vm236_vm0, %v4115_v28  ;;  %3470 = vmatprep.mubr.msk.f32.mxu0 %vm236_vm0, %v4101_v9 }
 0x169   :  { %3767 = vmatprep.subr.bf16.mxu0 %v3766_v34  ;;  %3771 = vmatprep.subr.bf16.mxu1 %v3770_v35 }
 0x16a   :  { %3769 = vmatpush3.bf16.msra.mxu0 %v3766_v34  ;;  %3773 = vmatpush3.bf16.msra.mxu1 %v3770_v35 }
 0x16b   :  { %3464 = vmatmul.mubr.msk.f32.gmra.mrb[10].mxu1 %vm236_vm0, %v4124_v29 }
 0x16c   :  { %3480 = vmatprep.mubr.msk.f32.mxu1 %vm236_vm0, %v4101_v9  ;;  %v3431_v37 = vpop.f32.mrb[4].mxu1 }
 0x16d   :  { %v3424_v36 = vpop.f32.mrb[4].mxu0  ;;  %3471 = vmatmul.mubr.msk.f32.vlgmr.msra.gmra.mrb[12].mxu0 %vm236_vm0, %v4110_v26  ;;  %v714_v39 = vpop.f32.mrb[5].mxu1 }
 0x16e   :  { %v633_v38 = vpop.f32.mrb[5].mxu0  ;;  %3473 = vmatprep.mubr.msk.f32.mxu0 %vm236_vm0, %v4115_v28  ;;  %v3778_v41 = vpack.c.bf16 %v3431_v37, %v714_v39 }
 0x16f   :  { %v3774_v40 = vpack.c.bf16 %v3424_v36, %v633_v38  ;;  %3481 = vmatmul.mubr.msk.f32.vlgmr.msra.gmra.mrb[12].mxu1 %vm236_vm0, %v4110_v26 }
 0x170   :  { %3483 = vmatprep.mubr.msk.f32.mxu1 %vm236_vm0, %v4115_v28  ;;  %3779 = vmatprep.subr.bf16.mxu1 %v3778_v41 }
 0x171   :  { %3474 = vmatmul.mubr.msk.f32.gmra.mrb[14].mxu0 %vm236_vm0, %v4124_v29  ;;  %3775 = vmatprep.subr.bf16.mxu0 %v3774_v40 }
 0x172   :  { %3777 = vmatpush3.bf16.msra.mxu0 %v3774_v40  ;;  %3781 = vmatpush3.bf16.msra.mxu1 %v3778_v41 }
 0x173   :  { %3490 = vmatprep.mubr.msk.f32.mxu0 %vm236_vm0, %v4101_v9  ;;  %3484 = vmatmul.mubr.msk.f32.gmra.mrb[14].mxu1 %vm236_vm0, %v4124_v29 }
 0x174   :  { %v3445_v43 = vpop.f32.mrb[6].mxu1  ;;  %3500 = vmatprep.mubr.msk.f32.mxu1 %vm236_vm0, %v4101_v9 }
 0x175   :  { %v3438_v42 = vpop.f32.mrb[6].mxu0  ;;  %3491 = vmatmul.mubr.msk.f32.vlgmr.msra.gmra.mrb[16].mxu0 %vm236_vm0, %v4110_v26  ;;  %v876_v45 = vpop.f32.mrb[7].mxu1 }
 0x176   :  { %v795_v44 = vpop.f32.mrb[7].mxu0  ;;  %3493 = vmatprep.mubr.msk.f32.mxu0 %vm236_vm0, %v4115_v28  ;;  %v3786_v49 = vpack.c.bf16 %v3445_v43, %v876_v45 }
 0x177   :  { %v3782_v48 = vpack.c.bf16 %v3438_v42, %v795_v44  ;;  %3501 = vmatmul.mubr.msk.f32.vlgmr.msra.gmra.mrb[16].mxu1 %vm236_vm0, %v4110_v26 }
 0x178   :  { %3787 = vmatprep.subr.bf16.mxu1 %v3786_v49  ;;  %3503 = vmatprep.mubr.msk.f32.mxu1 %vm236_vm0, %v4115_v28 }
 0x179   :  { %3494 = vmatmul.mubr.msk.f32.gmra.mrb[18].mxu0 %vm236_vm0, %v4124_v29  ;;  %3783 = vmatprep.subr.bf16.mxu0 %v3782_v48 }
 0x17a   :  { %3785 = vmatpush3.bf16.msra.mxu0 %v3782_v48  ;;  %3789 = vmatpush3.bf16.msra.mxu1 %v3786_v49 }
 0x17b   :  { %3504 = vmatmul.mubr.msk.f32.gmra.mrb[18].mxu1 %vm236_vm0, %v4124_v29  ;;  %3510 = vmatprep.mubr.msk.f32.mxu0 %vm236_vm0, %v4101_v9 }
 0x17c   :  { %3520 = vmatprep.mubr.msk.f32.mxu1 %vm236_vm0, %v4101_v9  ;;  %3791 = vmatprep.subr.bf16.mxu0 %v4168_v50 }
 0x17d   :  { %3511 = vmatmul.mubr.msk.f32.vlgmr.msra.gmra.mrb[20].mxu0 %vm236_vm0, %v4110_v26  ;;  %3799 = vmatprep.subr.bf16.mxu1 %v4168_v50 }
 0x17e   :  { %3513 = vmatprep.mubr.msk.f32.mxu0 %vm236_vm0, %v4115_v28  ;;  %3793 = vmatpush3.bf16.msra.mxu0 %v4168_v50 }
 0x17f   :  { %3521 = vmatmul.mubr.msk.f32.vlgmr.msra.gmra.mrb[20].mxu1 %vm236_vm0, %v4110_v26  ;;  %3795 = vmatprep.subr.bf16.mxu0 %v4200_v53 }
 0x180   :  { %3523 = vmatprep.mubr.msk.f32.mxu1 %vm236_vm0, %v4115_v28  ;;  %3801 = vmatpush3.bf16.msra.mxu1 %v4168_v50 }
 0x181   :  { %3514 = vmatmul.mubr.msk.f32.gmra.mrb[22].mxu0 %vm236_vm0, %v4124_v29  ;;  %3803 = vmatprep.subr.bf16.mxu1 %v4200_v53 }
 0x182   :  { %3797 = vmatpush3.bf16.msra.mxu0 %v4200_v53 }
 0x183   :  { %3524 = vmatmul.mubr.msk.f32.gmra.mrb[22].mxu1 %vm236_vm0, %v4124_v29  ;;  %3807 = vmatprep.subr.bf16.mxu0 %v4168_v50 }
 0x184   :  { %3805 = vmatpush3.bf16.msra.mxu1 %v4200_v53 }
 0x185   :  { %3815 = vmatprep.subr.bf16.mxu1 %v4168_v50 }
 0x236   :  { %v3452_v54 = vpop.f32.mrb[8].mxu0 }
 0x237   :  { %vm1582_vm1 = vcmp.ge.f32.partialorder %v3452_v54, 0.0  ;;  %v1614_v55 = vmul.f32 0.01, %v3452_v54  ;;  %v967_v56 = vpop.f32.mrb[9].mxu0 }
 0x238   :  { %vm1581_vm2 = vcmp.ge.f32.partialorder %v967_v56, 0.0  ;;  %v1613_v57 = vmul.f32 0.01, %v967_v56 }
 0x239   :  { %v1646_v58 = vsel %vm1582_vm1, %v3452_v54, %v1614_v55 }
 0x23a   :  { %v3462_v59 = vpop.f32.mrb[8].mxu1  ;;  %v3455_v60 = vpop.f32.mrb[10].mxu0  ;;  %v1645_v61 = vsel %vm1581_vm2, %v967_v56, %v1613_v57 }
 0x23b   :  { %v1618_v62 = vmul.f32 0.01, %v3462_v59  ;;  %v1616_v63 = vmul.f32 0.01, %v3455_v60  ;;  %3534 = vmatprep.mubr.msk.f32.mxu0 %vm1681_vm3, %v1645_v61  ;;  %vm1586_vm4 = vcmp.ge.f32.partialorder %v3462_v59, 0.0  ;;  %vm1584_vm5 = vcmp.ge.f32.partialorder %v3455_v60, 0.0 }
 0x23c   :  { %v1052_v0 = vpop.f32.mrb[9].mxu1  ;;  %v977_v1 = vpop.f32.mrb[11].mxu0  ;;  %3535 = vmatmul.mubr.msk.f32.vlgmr.msra.gmra.mrb[24].mxu0 %vm1681_vm3, %v1646_v58 }
 0x23d   :  { %vm1585_vm6 = vcmp.ge.f32.partialorder %v1052_v0, 0.0  ;;  %v1617_v2 = vmul.f32 0.01, %v1052_v0  ;;  %vm1583_vm7 = vcmp.ge.f32.partialorder %v977_v1, 0.0  ;;  %3809 = vmatpush3.bf16.msra.mxu0 %v4168_v50  ;;  %v1615_v3 = vmul.f32 0.01, %v977_v1 }
 0x23e   :  { %v3465_v4 = vpop.f32.mrb[10].mxu1  ;;  %3811 = vmatprep.subr.bf16.mxu0 %v4200_v53  ;;  %v1650_v5 = vsel %vm1586_vm4, %v3462_v59, %v1618_v62  ;;  %v1648_v10 = vsel %vm1584_vm5, %v3455_v60, %v1616_v63 }
 0x23f   :  { %v1620_v6 = vmul.f32 0.01, %v3465_v4  ;;  %v1062_v7 = vpop.f32.mrb[11].mxu1  ;;  %v1649_v8 = vsel %vm1585_vm6, %v1052_v0, %v1617_v2  ;;  %vm1588_vm8 = vcmp.ge.f32.partialorder %v3465_v4, 0.0  ;;  %v1647_v13 = vsel %vm1583_vm7, %v977_v1, %v1615_v3 }
 0x240   :  { %vm1587_vm9 = vcmp.ge.f32.partialorder %v1062_v7, 0.0  ;;  %v1619_v11 = vmul.f32 0.01, %v1062_v7  ;;  %3548 = vmatprep.mubr.msk.f32.mxu1 %vm1681_vm3, %v1649_v8  ;;  %v3472_v12 = vpop.f32.mrb[12].mxu0  ;;  %3537 = vmatprep.mubr.msk.f32.mxu0 %vm1681_vm3, %v1647_v13 }
 0x241   :  { %v1622_v14 = vmul.f32 0.01, %v3472_v12  ;;  %3549 = vmatmul.mubr.msk.f32.vlgmr.msra.gmra.mrb[24].mxu1 %vm1681_vm3, %v1650_v5  ;;  %v1137_v15 = vpop.f32.mrb[13].mxu0  ;;  %vm1590_vm10 = vcmp.ge.f32.partialorder %v3472_v12, 0.0  ;;  %3538 = vmatmul.mubr.msk.f32.gmra.mrb[26].mxu0 %vm1681_vm3, %v1648_v10  ;;  %v1652_v20 = vsel %vm1588_vm8, %v3465_v4, %v1620_v6 }
 0x242   :  { %vm1589_vm11 = vcmp.ge.f32.partialorder %v1137_v15, 0.0  ;;  %v1621_v16 = vmul.f32 0.01, %v1137_v15  ;;  %3817 = vmatpush3.bf16.msra.mxu1 %v4168_v50  ;;  %v3482_v17 = vpop.f32.mrb[12].mxu1  ;;  %v1651_v18 = vsel %vm1587_vm9, %v1062_v7, %v1619_v11  ;;  %3813 = vmatpush3.bf16.msra.mxu0 %v4200_v53 }
 0x243   :  { %v1222_v19 = vpop.f32.mrb[13].mxu1  ;;  %3551 = vmatprep.mubr.msk.f32.mxu1 %vm1681_vm3, %v1651_v18  ;;  %v1626_v9 = vmul.f32 0.01, %v3482_v17  ;;  %3819 = vmatprep.subr.bf16.mxu1 %v4200_v53  ;;  %v1654_v24 = vsel %vm1590_vm10, %v3472_v12, %v1622_v14  ;;  %vm1594_vm13 = vcmp.ge.f32.partialorder %v3482_v17, 0.0 }
 0x244   :  { %vm1593_vm12 = vcmp.ge.f32.partialorder %v1222_v19, 0.0  ;;  %v1625_v21 = vmul.f32 0.01, %v1222_v19  ;;  %v3475_v22 = vpop.f32.mrb[14].mxu0  ;;  %v1653_v23 = vsel %vm1589_vm11, %v1137_v15, %v1621_v16  ;;  %3823 = vmatprep.subr.bf16.mxu0 %v4168_v50 }
 0x245   :  { %v1624_v25 = vmul.f32 0.01, %v3475_v22  ;;  %3552 = vmatmul.mubr.msk.f32.gmra.mrb[26].mxu1 %vm1681_vm3, %v1652_v20  ;;  %v1147_v26 = vpop.f32.mrb[15].mxu0  ;;  %3562 = vmatprep.mubr.msk.f32.mxu0 %vm1681_vm3, %v1653_v23  ;;  %vm1592_vm14 = vcmp.ge.f32.partialorder %v3475_v22, 0.0  ;;  %v1658_v30 = vsel %vm1594_vm13, %v3482_v17, %v1626_v9 }
 0x246   :  { %vm1591_vm15 = vcmp.ge.f32.partialorder %v1147_v26, 0.0  ;;  %v1623_v27 = vmul.f32 0.01, %v1147_v26  ;;  %3821 = vmatpush3.bf16.msra.mxu1 %v4200_v53  ;;  %3563 = vmatmul.mubr.msk.f32.vlgmr.msra.gmra.mrb[28].mxu0 %vm1681_vm3, %v1654_v24  ;;  %v1657_v28 = vsel %vm1593_vm12, %v1222_v19, %v1625_v21  ;;  %v3485_v29 = vpop.f32.mrb[14].mxu1 }
 0x247   :  { %3576 = vmatprep.mubr.msk.f32.mxu1 %vm1681_vm3, %v1657_v28  ;;  %3825 = vmatpush3.bf16.msra.mxu0 %v4168_v50  ;;  %v1628_v31 = vmul.f32 0.01, %v3485_v29  ;;  %v1232_v32 = vpop.f32.mrb[15].mxu1  ;;  %vm1596_vm1 = vcmp.ge.f32.partialorder %v3485_v29, 0.0  ;;  %v1656_v36 = vsel %vm1592_vm14, %v3475_v22, %v1624_v25  ;;  %v4280_v22 = vld [vmem:[%s4389_s6] sm:$0xff] }
 0x248   :  { %v3492_v33 = vpop.f32.mrb[16].mxu0  ;;  %3831 = vmatprep.subr.bf16.mxu1 %v4168_v50  ;;  %v1655_v34 = vsel %vm1591_vm15, %v1147_v26, %v1623_v27  ;;  %3827 = vmatprep.subr.bf16.mxu0 %v4200_v53  ;;  %vm1595_vm2 = vcmp.ge.f32.partialorder %v1232_v32, 0.0  ;;  %v1627_v35 = vmul.f32 0.01, %v1232_v32 }
 0x249   :  { %3577 = vmatmul.mubr.msk.f32.vlgmr.msra.gmra.mrb[28].mxu1 %vm1681_vm3, %v1658_v30  ;;  %3565 = vmatprep.mubr.msk.f32.mxu0 %vm1681_vm3, %v1655_v34  ;;  %v1630_v37 = vmul.f32 0.01, %v3492_v33  ;;  %v1307_v38 = vpop.f32.mrb[17].mxu0  ;;  %vm1598_vm4 = vcmp.ge.f32.partialorder %v3492_v33, 0.0  ;;  %v1660_v45 = vsel %vm1596_vm1, %v3485_v29, %v1628_v31 }
 0x24a   :  { %3833 = vmatpush3.bf16.msra.mxu1 %v4168_v50  ;;  %3566 = vmatmul.mubr.msk.f32.gmra.mrb[30].mxu0 %vm1681_vm3, %v1656_v36  ;;  %vm1597_vm5 = vcmp.ge.f32.partialorder %v1307_v38, 0.0  ;;  %v1629_v39 = vmul.f32 0.01, %v1307_v38  ;;  %v3502_v40 = vpop.f32.mrb[16].mxu1  ;;  %v1659_v41 = vsel %vm1595_vm2, %v1232_v32, %v1627_v35 }
 0x24b   :  { %3829 = vmatpush3.bf16.msra.mxu0 %v4200_v53  ;;  %3835 = vmatprep.subr.bf16.mxu1 %v4200_v53  ;;  %v1634_v42 = vmul.f32 0.01, %v3502_v40  ;;  %v1392_v43 = vpop.f32.mrb[17].mxu1  ;;  %vm1602_vm6 = vcmp.ge.f32.partialorder %v3502_v40, 0.0  ;;  %v1662_v47 = vsel %vm1598_vm4, %v3492_v33, %v1630_v37 }
 0x24c   :  { %3579 = vmatprep.mubr.msk.f32.mxu1 %vm1681_vm3, %v1659_v41  ;;  %v3495_v44 = vpop.f32.mrb[18].mxu0  ;;  %3839 = vmatprep.subr.bf16.mxu0 %v4168_v50  ;;  %vm1601_vm7 = vcmp.ge.f32.partialorder %v1392_v43, 0.0  ;;  %v1633_v46 = vmul.f32 0.01, %v1392_v43  ;;  %v1661_v51 = vsel %vm1597_vm5, %v1307_v38, %v1629_v39  ;;  %v4289_v38 = vld [vmem:[%s4389_s6 + $0x8] sm:$0xff] }
 0x24d   :  { %3580 = vmatmul.mubr.msk.f32.gmra.mrb[30].mxu1 %vm1681_vm3, %v1660_v45  ;;  %v1632_v48 = vmul.f32 0.01, %v3495_v44  ;;  %v1317_v49 = vpop.f32.mrb[19].mxu0  ;;  %vm1600_vm8 = vcmp.ge.f32.partialorder %v3495_v44, 0.0  ;;  %3590 = vmatprep.mubr.msk.f32.mxu0 %vm1681_vm3, %v1661_v51  ;;  %v1666_v56 = vsel %vm1602_vm6, %v3502_v40, %v1634_v42 }
 0x24e   :  { %3837 = vmatpush3.bf16.msra.mxu1 %v4200_v53  ;;  %vm1599_vm9 = vcmp.ge.f32.partialorder %v1317_v49, 0.0  ;;  %v1631_v52 = vmul.f32 0.01, %v1317_v49  ;;  %v3505_v54 = vpop.f32.mrb[18].mxu1  ;;  %v1665_v55 = vsel %vm1601_vm7, %v1392_v43, %v1633_v46  ;;  %3591 = vmatmul.mubr.msk.f32.vlgmr.msra.gmra.mrb[32].mxu0 %vm1681_vm3, %v1662_v47 }
 0x24f   :  { %3847 = vmatprep.subr.bf16.mxu1 %v4168_v50  ;;  %v1636_v57 = vmul.f32 0.01, %v3505_v54  ;;  %v1402_v58 = vpop.f32.mrb[19].mxu1  ;;  %3604 = vmatprep.mubr.msk.f32.mxu1 %vm1681_vm3, %v1665_v55  ;;  %vm1604_vm10 = vcmp.ge.f32.partialorder %v3505_v54, 0.0  ;;  %v1664_v0 = vsel %vm1600_vm8, %v3495_v44, %v1632_v48 }
 0x250   :  { %vm1603_vm11 = vcmp.ge.f32.partialorder %v1402_v58, 0.0  ;;  %v1635_v59 = vmul.f32 0.01, %v1402_v58  ;;  %3841 = vmatpush3.bf16.msra.mxu0 %v4168_v50  ;;  %v3512_v60 = vpop.f32.mrb[20].mxu0  ;;  %v1663_v61 = vsel %vm1599_vm9, %v1317_v49, %v1631_v52 }
 0x251   :  { %3605 = vmatmul.mubr.msk.f32.vlgmr.msra.gmra.mrb[32].mxu1 %vm1681_vm3, %v1666_v56  ;;  %v1638_v62 = vmul.f32 0.01, %v3512_v60  ;;  %v1477_v63 = vpop.f32.mrb[21].mxu0  ;;  %3593 = vmatprep.mubr.msk.f32.mxu0 %vm1681_vm3, %v1663_v61  ;;  %vm1606_vm12 = vcmp.ge.f32.partialorder %v3512_v60, 0.0 }
 0x252   :  { %3849 = vmatpush3.bf16.msra.mxu1 %v4168_v50  ;;  %vm1605_vm13 = vcmp.ge.f32.partialorder %v1477_v63, 0.0  ;;  %v1637_v1 = vmul.f32 0.01, %v1477_v63  ;;  %v3522_v2 = vpop.f32.mrb[20].mxu1  ;;  %3843 = vmatprep.subr.bf16.mxu0 %v4200_v53  ;;  %v1667_v3 = vsel %vm1603_vm11, %v1402_v58, %v1635_v59  ;;  %v1668_v50 = vsel %vm1604_vm10, %v3505_v54, %v1636_v57 }
 0x253   :  { %3851 = vmatprep.subr.bf16.mxu1 %v4200_v53  ;;  %v1642_v4 = vmul.f32 0.01, %v3522_v2  ;;  %3594 = vmatmul.mubr.msk.f32.gmra.mrb[34].mxu0 %vm1681_vm3, %v1664_v0  ;;  %v1562_v5 = vpop.f32.mrb[21].mxu1  ;;  %vm1610_vm14 = vcmp.ge.f32.partialorder %v3522_v2, 0.0  ;;  %v1670_v10 = vsel %vm1606_vm12, %v3512_v60, %v1638_v62 }
 0x254   :  { %3607 = vmatprep.mubr.msk.f32.mxu1 %vm1681_vm3, %v1667_v3  ;;  %vm1609_vm15 = vcmp.ge.f32.partialorder %v1562_v5, 0.0  ;;  %v1641_v6 = vmul.f32 0.01, %v1562_v5  ;;  %3845 = vmatpush3.bf16.msra.mxu0 %v4200_v53  ;;  %v3515_v7 = vpop.f32.mrb[22].mxu0  ;;  %v1669_v8 = vsel %vm1605_vm13, %v1477_v63, %v1637_v1 }
 0x255   :  { %3608 = vmatmul.mubr.msk.f32.gmra.mrb[34].mxu1 %vm1681_vm3, %v1668_v50  ;;  %v1487_v11 = vpop.f32.mrb[23].mxu0  ;;  %3618 = vmatprep.mubr.msk.f32.mxu0 %vm1681_vm3, %v1669_v8  ;;  %v1640_v12 = vmul.f32 0.01, %v3515_v7  ;;  %v1674_v16 = vsel %vm1610_vm14, %v3522_v2, %v1642_v4  ;;  %vm1608_vm2 = vcmp.ge.f32.partialorder %v3515_v7, 0.0 }
 0x256   :  { %3853 = vmatpush3.bf16.msra.mxu1 %v4200_v53  ;;  %vm1607_vm1 = vcmp.ge.f32.partialorder %v1487_v11, 0.0  ;;  %v1639_v13 = vmul.f32 0.01, %v1487_v11  ;;  %v3525_v14 = vpop.f32.mrb[22].mxu1  ;;  %v1673_v15 = vsel %vm1609_vm15, %v1562_v5, %v1641_v6 }
 0x257   :  { %v1644_v17 = vmul.f32 0.01, %v3525_v14  ;;  %3619 = vmatmul.mubr.msk.f32.vlgmr.msra.gmra.mrb[36].mxu0 %vm1681_vm3, %v1670_v10  ;;  %v1572_v18 = vpop.f32.mrb[23].mxu1  ;;  %3632 = vmatprep.mubr.msk.f32.mxu1 %vm1681_vm3, %v1673_v15  ;;  %vm1612_vm4 = vcmp.ge.f32.partialorder %v3525_v14, 0.0  ;;  %v1672_v20 = vsel %vm1608_vm2, %v3515_v7, %v1640_v12 }
 0x258   :  { %vm1611_vm5 = vcmp.ge.f32.partialorder %v1572_v18, 0.0  ;;  %v1643_v19 = vmul.f32 0.01, %v1572_v18  ;;  %v1671_v53 = vsel %vm1607_vm1, %v1487_v11, %v1639_v13 }
 0x259   :  { %3633 = vmatmul.mubr.msk.f32.vlgmr.msra.gmra.mrb[36].mxu1 %vm1681_vm3, %v1674_v16  ;;  %3621 = vmatprep.mubr.msk.f32.mxu0 %vm1681_vm3, %v1671_v53  ;;  %v1676_v21 = vsel %vm1612_vm4, %v3525_v14, %v1644_v17 }
 0x25a   :  { %v1675_v9 = vsel %vm1611_vm5, %v1572_v18, %v1643_v19 }
 0x25b   :  { %3622 = vmatmul.mubr.msk.f32.gmra.mrb[38].mxu0 %vm1681_vm3, %v1672_v20  ;;  %3635 = vmatprep.mubr.msk.f32.mxu1 %vm1681_vm3, %v1675_v9 }
 0x25c   :  { %3646 = vmatprep.mubr.msk.f32.mxu0 %vm1681_vm3, %v4280_v22 }
 0x25d   :  { %3636 = vmatmul.mubr.msk.f32.gmra.mrb[38].mxu1 %vm1681_vm3, %v1676_v21 }
 0x25e   :  { %3657 = vmatprep.mubr.msk.f32.mxu1 %vm1681_vm3, %v4280_v22 }
 0x30f   :  { %v3536_v23 = vpop.f32.mrb[24].mxu0 }
 0x310   :  { %v1760_v24 = vpop.f32.mrb[25].mxu0 }
 0x311   :  { %v3854_v25 = vpack.c.bf16 %v3536_v23, %v1760_v24 }
 0x313   :  { %3855 = vmatprep.subr.bf16.mxu0 %v3854_v25 }
 0x314   :  { %v3550_v26 = vpop.f32.mrb[24].mxu1  ;;  %3857 = vmatpush3.bf16.msra.mxu0 %v3854_v25  ;;  %v3539_v27 = vpop.f32.mrb[26].mxu0 }
 0x315   :  { %v1857_v28 = vpop.f32.mrb[25].mxu1  ;;  %v1770_v30 = vpop.f32.mrb[27].mxu0 }
 0x316   :  { %v3862_v29 = vpack.c.bf16 %v3550_v26, %v1857_v28  ;;  %v3858_v31 = vpack.c.bf16 %v3539_v27, %v1770_v30 }
 0x318   :  { %v3553_v32 = vpop.f32.mrb[26].mxu1  ;;  %3863 = vmatprep.subr.bf16.mxu1 %v3862_v29  ;;  %3859 = vmatprep.subr.bf16.mxu0 %v3858_v31 }
 0x319   :  { %v1867_v33 = vpop.f32.mrb[27].mxu1  ;;  %3865 = vmatpush3.bf16.msra.mxu1 %v3862_v29  ;;  %v3564_v34 = vpop.f32.mrb[28].mxu0  ;;  %3861 = vmatpush3.bf16.msra.mxu0 %v3858_v31 }
 0x31a   :  { %v3866_v35 = vpack.c.bf16 %v3553_v32, %v1867_v33  ;;  %v1954_v36 = vpop.f32.mrb[29].mxu0 }
 0x31b   :  { %v3870_v37 = vpack.c.bf16 %v3564_v34, %v1954_v36 }
 0x31c   :  { %v3578_v39 = vpop.f32.mrb[28].mxu1  ;;  %3867 = vmatprep.subr.bf16.mxu1 %v3866_v35  ;;  %3647 = vmatmul.mubr.msk.f32.vlgmr.msra.gmra.mrb[40].mxu0 %vm1681_vm3, %v4289_v38 }
 0x31d   :  { %v2051_v40 = vpop.f32.mrb[29].mxu1  ;;  %3869 = vmatpush3.bf16.msra.mxu1 %v3866_v35  ;;  %v3567_v41 = vpop.f32.mrb[30].mxu0  ;;  %3871 = vmatprep.subr.bf16.mxu0 %v3870_v37 }
 0x31e   :  { %v3878_v42 = vpack.c.bf16 %v3578_v39, %v2051_v40  ;;  %v1964_v43 = vpop.f32.mrb[31].mxu0  ;;  %3873 = vmatpush3.bf16.msra.mxu0 %v3870_v37  ;;  %3668 = vmatprep.mubr.msk.f32.mxu0 %vm1681_vm3, %v4280_v22 }
 0x31f   :  { %v3874_v44 = vpack.c.bf16 %v3567_v41, %v1964_v43 }
 0x320   :  { %v3581_v45 = vpop.f32.mrb[30].mxu1  ;;  %3879 = vmatprep.subr.bf16.mxu1 %v3878_v42  ;;  %3658 = vmatmul.mubr.msk.f32.vlgmr.msra.gmra.mrb[40].mxu1 %vm1681_vm3, %v4289_v38 }
 0x321   :  { %v2061_v46 = vpop.f32.mrb[31].mxu1  ;;  %3881 = vmatpush3.bf16.msra.mxu1 %v3878_v42  ;;  %3875 = vmatprep.subr.bf16.mxu0 %v3874_v44  ;;  %v3592_v48 = vpop.f32.mrb[32].mxu0 }
 0x322   :  { %v3882_v47 = vpack.c.bf16 %v3581_v45, %v2061_v46  ;;  %3679 = vmatprep.mubr.msk.f32.mxu1 %vm1681_vm3, %v4280_v22  ;;  %3877 = vmatpush3.bf16.msra.mxu0 %v3874_v44  ;;  %v2148_v49 = vpop.f32.mrb[33].mxu0 }
 0x323   :  { %v3886_v52 = vpack.c.bf16 %v3592_v48, %v2148_v49 }
 0x324   :  { %v3606_v51 = vpop.f32.mrb[32].mxu1  ;;  %3883 = vmatprep.subr.bf16.mxu1 %v3882_v47 }
 0x325   :  { %v2245_v54 = vpop.f32.mrb[33].mxu1  ;;  %3885 = vmatpush3.bf16.msra.mxu1 %v3882_v47  ;;  %3669 = vmatmul.mubr.msk.f32.vlgmr.msra.gmra.mrb[42].mxu0 %vm1681_vm3, %v4289_v38 }
 0x326   :  { %v3894_v55 = vpack.c.bf16 %v3606_v51, %v2245_v54  ;;  %v3595_v56 = vpop.f32.mrb[34].mxu0  ;;  %3887 = vmatprep.subr.bf16.mxu0 %v3886_v52  ;;  %3690 = vmatprep.mubr.msk.f32.mxu0 %vm1681_vm3, %v4280_v22 }
 0x327   :  { %v2158_v57 = vpop.f32.mrb[35].mxu0  ;;  %3889 = vmatpush3.bf16.msra.mxu0 %v3886_v52 }
 0x328   :  { %v3609_v58 = vpop.f32.mrb[34].mxu1  ;;  %3895 = vmatprep.subr.bf16.mxu1 %v3894_v55  ;;  %v3890_v59 = vpack.c.bf16 %v3595_v56, %v2158_v57  ;;  %3680 = vmatmul.mubr.msk.f32.vlgmr.msra.gmra.mrb[42].mxu1 %vm1681_vm3, %v4289_v38 }
 0x329   :  { %v2255_v60 = vpop.f32.mrb[35].mxu1  ;;  %3897 = vmatpush3.bf16.msra.mxu1 %v3894_v55  ;;  %3701 = vmatprep.mubr.msk.f32.mxu1 %vm1681_vm3, %v4280_v22 }
 0x32a   :  { %v3898_v61 = vpack.c.bf16 %v3609_v58, %v2255_v60  ;;  %v3620_v62 = vpop.f32.mrb[36].mxu0  ;;  %3891 = vmatprep.subr.bf16.mxu0 %v3890_v59 }
 0x32b   :  { %v2342_v63 = vpop.f32.mrb[37].mxu0  ;;  %3893 = vmatpush3.bf16.msra.mxu0 %v3890_v59 }
 0x32c   :  { %v3634_v0 = vpop.f32.mrb[36].mxu1  ;;  %3899 = vmatprep.subr.bf16.mxu1 %v3898_v61  ;;  %v3902_v1 = vpack.c.bf16 %v3620_v62, %v2342_v63 }
 0x32d   :  { %v2439_v2 = vpop.f32.mrb[37].mxu1  ;;  %3901 = vmatpush3.bf16.msra.mxu1 %v3898_v61 }
 0x32e   :  { %v3910_v3 = vpack.c.bf16 %v3634_v0, %v2439_v2  ;;  %v3623_v4 = vpop.f32.mrb[38].mxu0  ;;  %3903 = vmatprep.subr.bf16.mxu0 %v3902_v1  ;;  %3691 = vmatmul.mubr.msk.f32.vlgmr.msra.gmra.mrb[44].mxu0 %vm1681_vm3, %v4289_v38 }
 0x32f   :  { %v2352_v5 = vpop.f32.mrb[39].mxu0  ;;  %3905 = vmatpush3.bf16.msra.mxu0 %v3902_v1  ;;  %3712 = vmatprep.mubr.msk.f32.mxu0 %vm1681_vm3, %v4280_v22 }
 0x330   :  { %v3637_v50 = vpop.f32.mrb[38].mxu1  ;;  %3911 = vmatprep.subr.bf16.mxu1 %v3910_v3  ;;  %v3906_v6 = vpack.c.bf16 %v3623_v4, %v2352_v5  ;;  %3702 = vmatmul.mubr.msk.f32.vlgmr.msra.gmra.mrb[44].mxu1 %vm1681_vm3, %v4289_v38 }
 0x331   :  { %v2449_v7 = vpop.f32.mrb[39].mxu1  ;;  %3913 = vmatpush3.bf16.msra.mxu1 %v3910_v3  ;;  %3723 = vmatprep.mubr.msk.f32.mxu1 %vm1681_vm3, %v4280_v22 }
 0x332   :  { %v3914_v8 = vpack.c.bf16 %v3637_v50, %v2449_v7  ;;  %3907 = vmatprep.subr.bf16.mxu0 %v3906_v6 }
 0x333   :  { %3909 = vmatpush3.bf16.msra.mxu0 %v3906_v6 }
 0x334   :  { %3915 = vmatprep.subr.bf16.mxu1 %v3914_v8 }
 0x335   :  { %3917 = vmatpush3.bf16.msra.mxu1 %v3914_v8 }
 0x336   :  { %3713 = vmatmul.mubr.msk.f32.vlgmr.msra.gmra.mrb[46].mxu0 %vm1681_vm3, %v4289_v38 }
 0x338   :  { %3724 = vmatmul.mubr.msk.f32.vlgmr.msra.gmra.mrb[46].mxu1 %vm1681_vm3, %v4289_v38 }
 0x3ef   :  { %v3648_v10 = vpop.f32.mrb[40].mxu0 }
 0x3f0   :  { %3067 = vst.msk [vmem:[%s4390_s7 + $0x8] sm:$0xff] %vm236_vm0, %v3648_v10  ;;  %v2532_v11 = vpop.f32.mrb[41].mxu0 }
 0x3f1   :  { %3066 = vst.msk [vmem:[%s4390_s7] sm:$0xff] %vm236_vm0, %v2532_v11 }
 0x3f3   :  { %v3659_v12 = vpop.f32.mrb[40].mxu1 }
 0x3f4   :  { %3069 = vst.msk [vmem:[%s4390_s7 + $0x18] sm:$0xff] %vm236_vm0, %v3659_v12  ;;  %v2607_v13 = vpop.f32.mrb[41].mxu1 }
 0x3f5   :  { %3068 = vst.msk [vmem:[%s4390_s7 + $0x10] sm:$0xff] %vm236_vm0, %v2607_v13 }
 0x3f8   :  { %v3670_v14 = vpop.f32.mrb[42].mxu0 }
 0x3f9   :  { %3071 = vst.msk [vmem:[%s4390_s7 + $0x28] sm:$0xff] %vm236_vm0, %v3670_v14  ;;  %v2682_v15 = vpop.f32.mrb[43].mxu0 }
 0x3fa   :  { %3070 = vst.msk [vmem:[%s4390_s7 + $0x20] sm:$0xff] %vm236_vm0, %v2682_v15 }
 0x3fb   :  { %v3681_v16 = vpop.f32.mrb[42].mxu1 }
 0x3fc   :  { %3073 = vst.msk [vmem:[%s4390_s7 + $0x38] sm:$0xff] %vm236_vm0, %v3681_v16  ;;  %v2757_v17 = vpop.f32.mrb[43].mxu1 }
 0x3fd   :  { %3072 = vst.msk [vmem:[%s4390_s7 + $0x30] sm:$0xff] %vm236_vm0, %v2757_v17 }
 0x401   :  { %v3692_v18 = vpop.f32.mrb[44].mxu0 }
 0x402   :  { %3075 = vst.msk [vmem:[%s4390_s7 + $0x48] sm:$0xff] %vm236_vm0, %v3692_v18  ;;  %v2832_v19 = vpop.f32.mrb[45].mxu0 }
 0x403   :  { %v3703_v53 = vpop.f32.mrb[44].mxu1  ;;  %3074 = vst.msk [vmem:[%s4390_s7 + $0x40] sm:$0xff] %vm236_vm0, %v2832_v19 }
 0x404   :  { %3077 = vst.msk [vmem:[%s4390_s7 + $0x58] sm:$0xff] %vm236_vm0, %v3703_v53  ;;  %v2907_v20 = vpop.f32.mrb[45].mxu1 }
 0x405   :  { %3076 = vst.msk [vmem:[%s4390_s7 + $0x50] sm:$0xff] %vm236_vm0, %v2907_v20 }
 0x409   :  { %v3714_v9 = vpop.f32.mrb[46].mxu0 }
 0x40a   :  { %3079 = vst.msk [vmem:[%s4390_s7 + $0x68] sm:$0xff] %vm236_vm0, %v3714_v9  ;;  %v2982_v21 = vpop.f32.mrb[47].mxu0 }
 0x40b   :  { %v3725_v22 = vpop.f32.mrb[46].mxu1  ;;  %3078 = vst.msk [vmem:[%s4390_s7 + $0x60] sm:$0xff] %vm236_vm0, %v2982_v21 }
 0x40c   :  { %3081 = vst.msk [vmem:[%s4390_s7 + $0x78] sm:$0xff] %vm236_vm0, %v3725_v22  ;;  %v3057_v23 = vpop.f32.mrb[47].mxu1 }
 0x40d   :  { %3080 = vst.msk [vmem:[%s4390_s7 + $0x70] sm:$0xff] %vm236_vm0, %v3057_v23 }

</bundles_post_ra>
